<compile_context>
chip_gen: v5e
topology: v5e:2x2
jax: 0.10.0
libtpu: 0.0.40
codegen_flags: <defaults>
</compile_context>

<pallas_src>
import jax
import jax.numpy as jnp
from jax.experimental import pallas as pl
from jax.experimental.pallas import tpu as pltpu

LEAK = 0.2           # LeakyReLU negative slope
EPS = 1e-5           # InstanceNorm eps (PyTorch default)
COMPUTE_DTYPE = jnp.float32   # bf16 in production; f32 accumulate either way.


def _round_up(x, m):
    return (x + m - 1) // m * m


# ---------------------------------------------------------------------------
# Kernel factory: one grid step = one sample.
#   stride == 2 : x_ref = (2, Ho+1, Wo_pad+1, 2*Cin)  row-phase slabs,
#                 width regrouped into column pairs -> 8 shifted matmuls
#   stride == 1 : x_ref = (1, Ho+3, Wo_pad+3, Cin)    padded sample,
#                 16 shifted matmuls (or VPU products for the 1-ch head)
#   w_ref       = (8, 2*Cin, Cout) | (16, Cin, Cout) | (16, 1, Cin)
#   o_ref       = (1, Ho*Wo_pad, Cout)
# ---------------------------------------------------------------------------
def _make_conv_kernel(*, stride, Ho, Wo, Wo_pad, Cin, Cout, mode):
    P_pad = Ho * Wo_pad
    Kc = 2 * Cin if stride == 2 else Cin   # per-tap contraction depth

    def kernel(x_ref, w_ref, b_ref, *rest):
        if mode == "in_leaky":
            g_ref, be_ref, o_ref = rest
        else:
            (o_ref,) = rest

        acc = None
        if stride == 2:
            # window[oh, ow], taps (di, 2*jg + sub):
            #   row 2*oh+di -> slab p=di%2, row oh + di//2
            #   cols (2*ow+2*jg, 2*ow+2*jg+1) -> pair column ow+jg, lanes sub*Cin..
            for di in range(4):
                p, a = di % 2, di // 2
                for jg in range(2):
                    win = x_ref[p, a:a + Ho, jg:jg + Wo_pad, :]
                    win2 = win.reshape(P_pad, Kc)      # Wo_pad % 8 == 0 -> trivial
                    term = jnp.dot(win2, w_ref[di * 2 + jg],
                                   preferred_element_type=jnp.float32)
                    acc = term if acc is None else acc + term
        else:
            for di in range(4):
                for dj in range(4):
                    win = x_ref[0, di:di + Ho, dj:dj + Wo_pad, :]
                    win2 = win.reshape(P_pad, Cin)
                    if mode == "sigmoid":
                        # Cout == 1: contract on the VPU; accumulate the
                        # (P, Cin) products, single lane reduction after loop.
                        term = win2.astype(jnp.float32) * \
                               w_ref[di * 4 + dj].astype(jnp.float32)   # (P_pad, Cin)
                    else:
                        term = jnp.dot(win2, w_ref[di * 4 + dj],
                                       preferred_element_type=jnp.float32)
                    acc = term if acc is None else acc + term

        if mode == "sigmoid":
            acc = jnp.sum(acc, axis=1, keepdims=True)               # (P_pad, 1)

        y = acc + b_ref[...].astype(jnp.float32)                    # (P_pad, Cout)

        if mode == "in_leaky":
            # InstanceNorm2d(affine=True): biased variance over spatial dims,
            # one pass (sum + sumsq).  Padded columns (ow >= Wo) excluded.
            if Wo_pad != Wo:
                col = jax.lax.broadcasted_iota(jnp.int32, (P_pad, 1), 0) % Wo_pad
                yv = jnp.where(col < Wo, y, 0.0)
            else:
                yv = y
            cnt = float(Ho * Wo)
            s1 = jnp.sum(yv, axis=0, keepdims=True)
            s2 = jnp.sum(yv * yv, axis=0, keepdims=True)
            mean = s1 / cnt
            var = jnp.maximum(s2 / cnt - mean * mean, 0.0)
            y = (y - mean) * jax.lax.rsqrt(var + EPS)
            y = y * g_ref[...] + be_ref[...]
            y = jnp.where(y > 0, y, LEAK * y)
        elif mode == "leaky":
            y = jnp.where(y > 0, y, LEAK * y)
        else:  # sigmoid
            y = jax.nn.sigmoid(y)

        o_ref[0] = y

    return kernel


# ---------------------------------------------------------------------------
# Wrapper glue: reflect pad (+ right zero-pad to an aligned output width) and,
# for stride-2 layers, the column-pair regroup + row-phase split.
# ---------------------------------------------------------------------------
def _conv_layer(x_nhwc, w, b, stride, mode, gamma=None, beta=None,
                cdtype=jnp.float32):
    N, H, W, Cin = x_nhwc.shape
    Cout = w.shape[0]
    xp = jnp.pad(x_nhwc, ((0, 0), (1, 1), (1, 1), (0, 0)), mode="reflect")
    Hp, Wp = H + 2, W + 2
    Ho = (Hp - 4) // stride + 1
    Wo = (Wp - 4) // stride + 1
    Wo_pad = _round_up(Wo, 8)          # sublane alignment for in-kernel reshape
    P_pad = Ho * Wo_pad

    if stride == 2:
        Hp_need = 2 * (Ho + 1)
        Wp_need = 2 * (Wo_pad + 1)
        pad_h = max(0, Hp_need - Hp)
        pad_w = max(0, Wp_need - Wp)
        if pad_h or pad_w:
            xp = jnp.pad(xp, ((0, 0), (0, pad_h), (0, pad_w), (0, 0)))
        xp = xp[:, :Hp_need, :Wp_need, :]
        # Column-pair regroup: lanes now hold both pixels of a width pair.
        xp2 = xp.reshape(N, Hp_need, Wo_pad + 1, 2 * Cin)
        # Row-phase split: phase p holds original rows p, p+2, p+4, ...
        slabs = jnp.stack([xp2[:, 0::2, :, :], xp2[:, 1::2, :, :]], axis=1)
        xin = slabs.reshape(N * 2, Ho + 1, Wo_pad + 1, 2 * Cin).astype(cdtype)
        x_spec = pl.BlockSpec((2, Ho + 1, Wo_pad + 1, 2 * Cin),
                              lambda n: (n, 0, 0, 0))
        # (Cout, Cin, 4, 4) -> (8, 2*Cin, Cout); tap = kh*2 + pair_group,
        # rows [sub*Cin : (sub+1)*Cin] belong to kw = 2*pair_group + sub.
        w_mat = jnp.transpose(w, (2, 3, 1, 0)).reshape(8, 2 * Cin, Cout).astype(cdtype)
        w_spec = pl.BlockSpec((8, 2 * Cin, Cout), lambda n: (0, 0, 0))
    else:
        Wp_need = Wo_pad + 3
        if Wp_need > Wp:
            xp = jnp.pad(xp, ((0, 0), (0, 0), (0, Wp_need - Wp), (0, 0)))
        xin = xp.astype(cdtype)
        x_spec = pl.BlockSpec((1, Hp, Wp_need, Cin), lambda n: (n, 0, 0, 0))
        if mode == "sigmoid":
            # (1, Cin, 4, 4) -> (16, 1, Cin): per-tap row vectors (VPU path).
            w_mat = jnp.transpose(w, (2, 3, 0, 1)).reshape(16, Cout, Cin).astype(cdtype)
            w_spec = pl.BlockSpec((16, Cout, Cin), lambda n: (0, 0, 0))
        else:
            # (Cout, Cin, 4, 4) -> (16, Cin, Cout), tap index = kh*4 + kw.
            w_mat = jnp.transpose(w, (2, 3, 1, 0)).reshape(16, Cin, Cout).astype(cdtype)
            w_spec = pl.BlockSpec((16, Cin, Cout), lambda n: (0, 0, 0))

    in_specs = [x_spec, w_spec, pl.BlockSpec((1, Cout), lambda n: (0, 0))]
    args = [xin, w_mat, b.reshape(1, Cout).astype(jnp.float32)]
    if mode == "in_leaky":
        in_specs += [pl.BlockSpec((1, Cout), lambda n: (0, 0)),
                     pl.BlockSpec((1, Cout), lambda n: (0, 0))]
        args += [gamma.reshape(1, Cout).astype(jnp.float32),
                 beta.reshape(1, Cout).astype(jnp.float32)]

    kern = _make_conv_kernel(stride=stride, Ho=Ho, Wo=Wo, Wo_pad=Wo_pad,
                             Cin=Cin, Cout=Cout, mode=mode)

    out = pl.pallas_call(
        kern,
        out_shape=jax.ShapeDtypeStruct((N, P_pad, Cout), jnp.float32),
        grid=(N,),
        in_specs=in_specs,
        out_specs=pl.BlockSpec((1, P_pad, Cout), lambda n: (n, 0, 0)),
        compiler_params=pltpu.CompilerParams(dimension_semantics=("parallel",)),
    )(*args)

    out = out.reshape(N, Ho, Wo_pad, Cout)
    if Wo_pad != Wo:
        out = out[:, :, :Wo, :]
    return out


# ---------------------------------------------------------------------------
# Parameter init (deterministic, synthetic) and forward.
# ---------------------------------------------------------------------------
def init_discriminator_params(key, in_channels, features):
    layers = []
    keys = jax.random.split(key, 2 * (len(features) + 1))
    ki = 0

    def conv_init(cout, cin):
        nonlocal ki
        w = 0.05 * jax.random.normal(keys[ki], (cout, cin, 4, 4), jnp.float32); ki += 1
        b = 0.05 * jax.random.normal(keys[ki], (cout,), jnp.float32); ki += 1
        return w, b

    # initial_layer: Conv(s=2) + LeakyReLU(0.2)
    w, b = conv_init(features[0], in_channels)
    layers.append(dict(w=w, b=b, stride=2, mode="leaky"))
    cin = features[0]
    # CNNBlocks: Conv + InstanceNorm(affine) + LeakyReLU(0.2)
    for f in features[1:]:
        stride = 1 if f == features[-1] else 2
        w, b = conv_init(f, cin)
        layers.append(dict(w=w, b=b, stride=stride, mode="in_leaky",
                           gamma=jnp.ones((f,), jnp.float32),
                           beta=jnp.zeros((f,), jnp.float32)))
        cin = f
    # final Conv(s=1) -> 1 channel, then sigmoid
    w, b = conv_init(1, cin)
    layers.append(dict(w=w, b=b, stride=1, mode="sigmoid"))
    return layers


def discriminator_forward(params, x_nchw, cdtype=COMPUTE_DTYPE):
    x = jnp.transpose(x_nchw, (0, 2, 3, 1))  # NCHW -> NHWC (C on lanes)
    for layer in params:
        x = _conv_layer(x, layer["w"], layer["b"], layer["stride"], layer["mode"],
                        gamma=layer.get("gamma"), beta=layer.get("beta"),
                        cdtype=cdtype)
    return jnp.transpose(x, (0, 3, 1, 2))    # NHWC -> NCHW


# ---------------------------------------------------------------------------
# Pure-JAX reference (correctness check only).
# ---------------------------------------------------------------------------
def _ref_forward(params, x_nchw):
    x = x_nchw
    for layer in params:
        xp = jnp.pad(x, ((0, 0), (0, 0), (1, 1), (1, 1)), mode="reflect")
        y = jax.lax.conv_general_dilated(
            xp, layer["w"], window_strides=(layer["stride"],) * 2, padding="VALID",
            dimension_numbers=("NCHW", "OIHW", "NCHW"),
            precision=jax.lax.Precision.HIGHEST)
        y = y + layer["b"][None, :, None, None]
        if layer["mode"] == "in_leaky":
            mean = jnp.mean(y, axis=(2, 3), keepdims=True)
            var = jnp.mean((y - mean) ** 2, axis=(2, 3), keepdims=True)
            y = (y - mean) * jax.lax.rsqrt(var + EPS)
            y = y * layer["gamma"][None, :, None, None] + layer["beta"][None, :, None, None]
            y = jnp.where(y > 0, y, LEAK * y)
        elif layer["mode"] == "leaky":
            y = jnp.where(y > 0, y, LEAK * y)
        else:
            y = jax.nn.sigmoid(y)
        x = y
    return x


if __name__ == "__main__":
    key = jax.random.PRNGKey(0)
    pkey, xkey = jax.random.split(key)
    in_channels = 3
    features = (8, 16, 32, 64)          # scaled-down version of [64,128,256,512]
    params = init_discriminator_params(pkey, in_channels, features)

    x = jax.random.normal(xkey, (2, in_channels, 32, 32), jnp.float32)

    out = discriminator_forward(params, x)
    out = jax.block_until_ready(out)

    ref = _ref_forward(params, x)
    assert out.shape == ref.shape == (2, 1, 2, 2), (out.shape, ref.shape)
    assert float(jnp.max(jnp.abs(out - ref))) < 1e-3

    print("KERNEL_OK")
</pallas_src>

<mosaic_0001>
module attributes {stable_mosaic.version = 11 : i64} {
  func.func @kernel(%arg0: i32, %arg1: memref<2x17x17x6xf32, #tpu.memory_space<vmem>>, %arg2: memref<8x6x8xf32, #tpu.memory_space<vmem>>, %arg3: memref<1x8xf32, #tpu.memory_space<vmem>>, %arg4: memref<1x256x8xf32, #tpu.memory_space<vmem>>) attributes {dimension_semantics = [#tpu.dimension_semantics<parallel>], iteration_bounds = array<i64: 2>, scalar_prefetch = 0 : i64, scratch_operands = 0 : i64, tpu.core_type = #tpu.core_type<tc>, window_params = [{transform_indices = @transform_0, window_bounds = array<i64: 2, 17, 17, 6>}, {pipeline_mode = #tpu.pipeline_mode<synchronous>, transform_indices = @transform_1, window_bounds = array<i64: 8, 6, 8>}, {pipeline_mode = #tpu.pipeline_mode<synchronous>, transform_indices = @transform_2, window_bounds = array<i64: 1, 8>}, {transform_indices = @transform_3, window_bounds = array<i64: 1, 256, 8>}]} {
    %c0 = arith.constant 0 : index
    %c0_0 = arith.constant 0 : index
    %c0_1 = arith.constant 0 : index
    %c0_2 = arith.constant 0 : index
    %0 = vector.load %arg1[%c0, %c0_0, %c0_1, %c0_2] : memref<2x17x17x6xf32, #tpu.memory_space<vmem>>, vector<1x16x16x6xf32>
    %1 = vector.shape_cast %0 : vector<1x16x16x6xf32> to vector<16x16x6xf32>
    %2 = vector.shape_cast %1 : vector<16x16x6xf32> to vector<256x6xf32>
    %c0_3 = arith.constant 0 : index
    %c0_4 = arith.constant 0 : index
    %c0_5 = arith.constant 0 : index
    %3 = vector.load %arg2[%c0_3, %c0_4, %c0_5] : memref<8x6x8xf32, #tpu.memory_space<vmem>>, vector<1x6x8xf32>
    %4 = vector.shape_cast %3 : vector<1x6x8xf32> to vector<6x8xf32>
    %cst = arith.constant dense<0.000000e+00> : vector<256x8xf32>
    %5 = tpu.matmul %2, %4, %cst {dimension_numbers = #tpu.dot_dimension_numbers<[1], [0], [0], [1], [0, 0, 1, 1], [], []>} : vector<256x6xf32>, vector<6x8xf32>, vector<256x8xf32> -> vector<256x8xf32>
    %c0_6 = arith.constant 0 : index
    %c0_7 = arith.constant 0 : index
    %c1 = arith.constant 1 : index
    %c0_8 = arith.constant 0 : index
    %6 = vector.load %arg1[%c0_6, %c0_7, %c1, %c0_8] : memref<2x17x17x6xf32, #tpu.memory_space<vmem>>, vector<1x16x16x6xf32>
    %7 = vector.shape_cast %6 : vector<1x16x16x6xf32> to vector<16x16x6xf32>
    %8 = vector.shape_cast %7 : vector<16x16x6xf32> to vector<256x6xf32>
    %c1_9 = arith.constant 1 : index
    %c0_10 = arith.constant 0 : index
    %c0_11 = arith.constant 0 : index
    %9 = vector.load %arg2[%c1_9, %c0_10, %c0_11] : memref<8x6x8xf32, #tpu.memory_space<vmem>>, vector<1x6x8xf32>
    %10 = vector.shape_cast %9 : vector<1x6x8xf32> to vector<6x8xf32>
    %cst_12 = arith.constant dense<0.000000e+00> : vector<256x8xf32>
    %11 = tpu.matmul %8, %10, %cst_12 {dimension_numbers = #tpu.dot_dimension_numbers<[1], [0], [0], [1], [0, 0, 1, 1], [], []>} : vector<256x6xf32>, vector<6x8xf32>, vector<256x8xf32> -> vector<256x8xf32>
    %12 = arith.addf %5, %11 : vector<256x8xf32>
    %c1_13 = arith.constant 1 : index
    %c0_14 = arith.constant 0 : index
    %c0_15 = arith.constant 0 : index
    %c0_16 = arith.constant 0 : index
    %13 = vector.load %arg1[%c1_13, %c0_14, %c0_15, %c0_16] : memref<2x17x17x6xf32, #tpu.memory_space<vmem>>, vector<1x16x16x6xf32>
    %14 = vector.shape_cast %13 : vector<1x16x16x6xf32> to vector<16x16x6xf32>
    %15 = vector.shape_cast %14 : vector<16x16x6xf32> to vector<256x6xf32>
    %c2 = arith.constant 2 : index
    %c0_17 = arith.constant 0 : index
    %c0_18 = arith.constant 0 : index
    %16 = vector.load %arg2[%c2, %c0_17, %c0_18] : memref<8x6x8xf32, #tpu.memory_space<vmem>>, vector<1x6x8xf32>
    %17 = vector.shape_cast %16 : vector<1x6x8xf32> to vector<6x8xf32>
    %cst_19 = arith.constant dense<0.000000e+00> : vector<256x8xf32>
    %18 = tpu.matmul %15, %17, %cst_19 {dimension_numbers = #tpu.dot_dimension_numbers<[1], [0], [0], [1], [0, 0, 1, 1], [], []>} : vector<256x6xf32>, vector<6x8xf32>, vector<256x8xf32> -> vector<256x8xf32>
    %19 = arith.addf %12, %18 : vector<256x8xf32>
    %c1_20 = arith.constant 1 : index
    %c0_21 = arith.constant 0 : index
    %c1_22 = arith.constant 1 : index
    %c0_23 = arith.constant 0 : index
    %20 = vector.load %arg1[%c1_20, %c0_21, %c1_22, %c0_23] : memref<2x17x17x6xf32, #tpu.memory_space<vmem>>, vector<1x16x16x6xf32>
    %21 = vector.shape_cast %20 : vector<1x16x16x6xf32> to vector<16x16x6xf32>
    %22 = vector.shape_cast %21 : vector<16x16x6xf32> to vector<256x6xf32>
    %c3 = arith.constant 3 : index
    %c0_24 = arith.constant 0 : index
    %c0_25 = arith.constant 0 : index
    %23 = vector.load %arg2[%c3, %c0_24, %c0_25] : memref<8x6x8xf32, #tpu.memory_space<vmem>>, vector<1x6x8xf32>
    %24 = vector.shape_cast %23 : vector<1x6x8xf32> to vector<6x8xf32>
    %cst_26 = arith.constant dense<0.000000e+00> : vector<256x8xf32>
    %25 = tpu.matmul %22, %24, %cst_26 {dimension_numbers = #tpu.dot_dimension_numbers<[1], [0], [0], [1], [0, 0, 1, 1], [], []>} : vector<256x6xf32>, vector<6x8xf32>, vector<256x8xf32> -> vector<256x8xf32>
    %26 = arith.addf %19, %25 : vector<256x8xf32>
    %c0_27 = arith.constant 0 : index
    %c1_28 = arith.constant 1 : index
    %c0_29 = arith.constant 0 : index
    %c0_30 = arith.constant 0 : index
    %27 = vector.load %arg1[%c0_27, %c1_28, %c0_29, %c0_30] : memref<2x17x17x6xf32, #tpu.memory_space<vmem>>, vector<1x16x16x6xf32>
    %28 = vector.shape_cast %27 : vector<1x16x16x6xf32> to vector<16x16x6xf32>
    %29 = vector.shape_cast %28 : vector<16x16x6xf32> to vector<256x6xf32>
    %c4 = arith.constant 4 : index
    %c0_31 = arith.constant 0 : index
    %c0_32 = arith.constant 0 : index
    %30 = vector.load %arg2[%c4, %c0_31, %c0_32] : memref<8x6x8xf32, #tpu.memory_space<vmem>>, vector<1x6x8xf32>
    %31 = vector.shape_cast %30 : vector<1x6x8xf32> to vector<6x8xf32>
    %cst_33 = arith.constant dense<0.000000e+00> : vector<256x8xf32>
    %32 = tpu.matmul %29, %31, %cst_33 {dimension_numbers = #tpu.dot_dimension_numbers<[1], [0], [0], [1], [0, 0, 1, 1], [], []>} : vector<256x6xf32>, vector<6x8xf32>, vector<256x8xf32> -> vector<256x8xf32>
    %33 = arith.addf %26, %32 : vector<256x8xf32>
    %c0_34 = arith.constant 0 : index
    %c1_35 = arith.constant 1 : index
    %c1_36 = arith.constant 1 : index
    %c0_37 = arith.constant 0 : index
    %34 = vector.load %arg1[%c0_34, %c1_35, %c1_36, %c0_37] : memref<2x17x17x6xf32, #tpu.memory_space<vmem>>, vector<1x16x16x6xf32>
    %35 = vector.shape_cast %34 : vector<1x16x16x6xf32> to vector<16x16x6xf32>
    %36 = vector.shape_cast %35 : vector<16x16x6xf32> to vector<256x6xf32>
    %c5 = arith.constant 5 : index
    %c0_38 = arith.constant 0 : index
    %c0_39 = arith.constant 0 : index
    %37 = vector.load %arg2[%c5, %c0_38, %c0_39] : memref<8x6x8xf32, #tpu.memory_space<vmem>>, vector<1x6x8xf32>
    %38 = vector.shape_cast %37 : vector<1x6x8xf32> to vector<6x8xf32>
    %cst_40 = arith.constant dense<0.000000e+00> : vector<256x8xf32>
    %39 = tpu.matmul %36, %38, %cst_40 {dimension_numbers = #tpu.dot_dimension_numbers<[1], [0], [0], [1], [0, 0, 1, 1], [], []>} : vector<256x6xf32>, vector<6x8xf32>, vector<256x8xf32> -> vector<256x8xf32>
    %40 = arith.addf %33, %39 : vector<256x8xf32>
    %c1_41 = arith.constant 1 : index
    %c1_42 = arith.constant 1 : index
    %c0_43 = arith.constant 0 : index
    %c0_44 = arith.constant 0 : index
    %41 = vector.load %arg1[%c1_41, %c1_42, %c0_43, %c0_44] : memref<2x17x17x6xf32, #tpu.memory_space<vmem>>, vector<1x16x16x6xf32>
    %42 = vector.shape_cast %41 : vector<1x16x16x6xf32> to vector<16x16x6xf32>
    %43 = vector.shape_cast %42 : vector<16x16x6xf32> to vector<256x6xf32>
    %c6 = arith.constant 6 : index
    %c0_45 = arith.constant 0 : index
    %c0_46 = arith.constant 0 : index
    %44 = vector.load %arg2[%c6, %c0_45, %c0_46] : memref<8x6x8xf32, #tpu.memory_space<vmem>>, vector<1x6x8xf32>
    %45 = vector.shape_cast %44 : vector<1x6x8xf32> to vector<6x8xf32>
    %cst_47 = arith.constant dense<0.000000e+00> : vector<256x8xf32>
    %46 = tpu.matmul %43, %45, %cst_47 {dimension_numbers = #tpu.dot_dimension_numbers<[1], [0], [0], [1], [0, 0, 1, 1], [], []>} : vector<256x6xf32>, vector<6x8xf32>, vector<256x8xf32> -> vector<256x8xf32>
    %47 = arith.addf %40, %46 : vector<256x8xf32>
    %c1_48 = arith.constant 1 : index
    %c1_49 = arith.constant 1 : index
    %c1_50 = arith.constant 1 : index
    %c0_51 = arith.constant 0 : index
    %48 = vector.load %arg1[%c1_48, %c1_49, %c1_50, %c0_51] : memref<2x17x17x6xf32, #tpu.memory_space<vmem>>, vector<1x16x16x6xf32>
    %49 = vector.shape_cast %48 : vector<1x16x16x6xf32> to vector<16x16x6xf32>
    %50 = vector.shape_cast %49 : vector<16x16x6xf32> to vector<256x6xf32>
    %c7 = arith.constant 7 : index
    %c0_52 = arith.constant 0 : index
    %c0_53 = arith.constant 0 : index
    %51 = vector.load %arg2[%c7, %c0_52, %c0_53] : memref<8x6x8xf32, #tpu.memory_space<vmem>>, vector<1x6x8xf32>
    %52 = vector.shape_cast %51 : vector<1x6x8xf32> to vector<6x8xf32>
    %cst_54 = arith.constant dense<0.000000e+00> : vector<256x8xf32>
    %53 = tpu.matmul %50, %52, %cst_54 {dimension_numbers = #tpu.dot_dimension_numbers<[1], [0], [0], [1], [0, 0, 1, 1], [], []>} : vector<256x6xf32>, vector<6x8xf32>, vector<256x8xf32> -> vector<256x8xf32>
    %54 = arith.addf %47, %53 : vector<256x8xf32>
    %c0_55 = arith.constant 0 : index
    %c0_56 = arith.constant 0 : index
    %55 = vector.load %arg3[%c0_55, %c0_56] : memref<1x8xf32, #tpu.memory_space<vmem>>, vector<1x8xf32>
    %56 = vector.broadcast %55 : vector<1x8xf32> to vector<256x8xf32>
    %57 = arith.addf %54, %56 : vector<256x8xf32>
    %cst_57 = arith.constant 0.000000e+00 : f32
    %58 = vector.broadcast %cst_57 : f32 to vector<256x8xf32>
    %59 = arith.cmpf ogt, %57, %58 : vector<256x8xf32>
    %cst_58 = arith.constant 2.000000e-01 : f32
    %60 = vector.broadcast %cst_58 : f32 to vector<256x8xf32>
    %61 = arith.mulf %60, %57 : vector<256x8xf32>
    %62 = arith.select %59, %57, %61 : vector<256x8xi1>, vector<256x8xf32>
    %c0_59 = arith.constant 0 : index
    %c0_60 = arith.constant 0 : index
    %c0_61 = arith.constant 0 : index
    %63 = vector.load %arg4[%c0_59, %c0_60, %c0_61] : memref<1x256x8xf32, #tpu.memory_space<vmem>>, vector<1x256x8xf32>
    %64 = vector.shape_cast %63 : vector<1x256x8xf32> to vector<256x8xf32>
    %65 = vector.shape_cast %62 : vector<256x8xf32> to vector<1x256x8xf32>
    tpu.vector_store %arg4[%c0_59, %c0_60, %c0_61], %65 {strides = array<i32>} : memref<1x256x8xf32, #tpu.memory_space<vmem>>, vector<1x256x8xf32>,
    return
  }
  func.func @transform_0(%arg0: i32) -> (i32, i32, i32, i32) {
    %c0_i32 = arith.constant 0 : i32
    %c0_i32_0 = arith.constant 0 : i32
    %c0_i32_1 = arith.constant 0 : i32
    %c0_i32_2 = arith.constant 0 : i32
    return %arg0, %c0_i32, %c0_i32_0, %c0_i32_1 : i32, i32, i32, i32
  }
  func.func @transform_1(%arg0: i32) -> (i32, i32, i32) {
    %c0_i32 = arith.constant 0 : i32
    %c0_i32_0 = arith.constant 0 : i32
    %c0_i32_1 = arith.constant 0 : i32
    %c0_i32_2 = arith.constant 0 : i32
    return %c0_i32, %c0_i32_0, %c0_i32_1 : i32, i32, i32
  }
  func.func @transform_2(%arg0: i32) -> (i32, i32) {
    %c0_i32 = arith.constant 0 : i32
    %c0_i32_0 = arith.constant 0 : i32
    %c0_i32_1 = arith.constant 0 : i32
    return %c0_i32, %c0_i32_0 : i32, i32
  }
  func.func @transform_3(%arg0: i32) -> (i32, i32, i32) {
    %c0_i32 = arith.constant 0 : i32
    %c0_i32_0 = arith.constant 0 : i32
    %c0_i32_1 = arith.constant 0 : i32
    return %arg0, %c0_i32, %c0_i32_0 : i32, i32, i32
  }
}

</mosaic_0001>

<bundles_post_ra>
// kernel: tpu_custom_call.1
= control target key start
LH: loop header
LB: loop body
LE: loop exit
PB: predicated region body
PF: predicated region fallthrough
CT: control target
= control target key end

     0   :  { %s3073_s12 = smov 0   ;;  %s4149_s0 = inlined_call_operand.vmem [shape: f32[4,17,17,6], index: 0, kind: input, shape index: {}]   ;;  %s4150_s1 = inlined_call_operand.vmem [shape: f32[8,6,8], index: 1, kind: input, shape index: {}]   ;;  %s4151_s2 = inlined_call_operand.vmem [shape: f32[1,8], index: 2, kind: input, shape index: {}]   ;;  %s4152_s3 = inlined_call_operand.vmem [shape: f32[2,256,8], index: 3, kind: output, shape index: {}]  }
   0x1 LB: > { %s3079_s13 = sadd.s32 4294967295, %s3051_s12   ;;  %p2564_p0 = scmp.ge.s32.totalorder %s3051_s12, 1  ;;  %s3051_s12 = sphi %s3073_s12, %s13_s12  }
   0x2   : > { %p139_p1 = scmp.lt.s32.totalorder %s3051_s12, 3 }
   0x4   : > { %p140_p2 = pnand %p2564_p0, %p139_p1 }
   0x6   : > { %143 = sbr.rel (%p140_p2) target bundleno = 665 (0x299), region = 32 }
   0xb   : > { %v2569_v0 = vld [vmem:[%s4150_s1 + $0x8] sm:$0x3f]  ;;  %vm340_vm0 = vcmask 1045504   ;;  %v2668_v1 = vld [vmem:[%s4150_s1 + $0x10] sm:$0x3f]  ;;  %s2565_s18 = sshll.u32 %s3079_s13, 1 }
   0xc   : > { %2570 = vmatpush.msk.msra.mxu0 %vm340_vm0, %v2569_v0  ;;  %2669 = vmatpush.msk.msra.mxu2 %vm340_vm0, %v2668_v1  ;;  %p165_p3 = scmp.lt.s32.totalorder %s2565_s18, 3  ;;  %v2932_v2 = vld [vmem:[%s4150_s1 + $0x30] sm:$0x3f]  ;;  %v208_v3 = vld [vmem:[%s4150_s1] sm:$0x3f]  ;;  %vm243_vm1 = vcmask 48128  }
   0xd   : > { %2603 = vmatpush.msk.msra.mxu1 %vm340_vm0, %v208_v3  ;;  %v2734_v4 = vld [vmem:[%s4150_s1 + $0x18] sm:$0x3f]  ;;  %v2800_v5 = vld [vmem:[%s4150_s1 + $0x20] sm:$0x3f]  ;;  %v2866_v7 = vld [vmem:[%s4150_s1 + $0x28] sm:$0x3f] }
   0xe   : > { %2933 = vmatpush.msk.msrb.mxu2 %vm340_vm0, %v2932_v2  ;;  %v2998_v6 = vld [vmem:[%s4150_s1 + $0x38] sm:$0x3f]  ;;  %s4350_s18 = smov (!%p165_p3, %s2565_s18), 3  ;;  %2735 = vmatpush.msk.msra.mxu3 %vm340_vm0, %v2734_v4  ;;  %p171_p4 = scmp.lt.s32.totalorder %s3079_s13, 1  ;;  %vm2472_vm3 = vcmask 64512  }
   0xf   : > { %2801 = vmatpush.msk.msrb.mxu0 %vm340_vm0, %v2800_v5  ;;  %2867 = vmatpush.msk.msrb.mxu1 %vm340_vm0, %v2866_v7  ;;  %s3035_s4 = smul.u32 408, %s4350_s18 }
  0x10   : > { %2999 = vmatpush.msk.msrb.mxu3 %vm340_vm0, %v2998_v6  ;;  %s4352_s13 = smov (!%p171_p4, %s3079_s13), 1 }
  0x11   : > { %s3119_s7 = scalar_lea.vmem %s4149_s0, %s3035_s4  ;;  %s3034_s10 = sshll.u32 %s4352_s13, 8 }
  0x12   : > { %v209_v8 = vld [vmem:[%s3119_s7 + $0x1] sm:$0xff]  ;;  %v2636_v9 = vld [vmem:[%s3119_s7 + $0x198] sm:$0xff]  ;;  %v210_v12 = vld [vmem:[%s3119_s7 + $0x9] sm:$0xff]  ;;  %s3907_s15 = scalar_lea.vmem %s4152_s3, %s3034_s10 }
  0x13   : > { %v176_v10 = vld [vmem:[%s3119_s7] sm:$0xff]  ;;  %2571 = vmatmul.msk.f32.vlgmr.msra.gmra.mxu0 %vm243_vm1, %v209_v8  ;;  %2670 = vmatmul.msk.f32.vlgmr.msra.gmra.mxu2 %vm243_vm1, %v2636_v9  ;;  %v177_v14 = vld [vmem:[%s3119_s7 + $0x8] sm:$0xff]  ;;  %v3141_v17 = vld [vmem:[%s3119_s7 + $0x1b0] sm:$0xff] }
  0x14   : > { %v2702_v11 = vld [vmem:[%s3119_s7 + $0x199] sm:$0xff]  ;;  %2604 = vmatmul.msk.f32.vlgmr.msra.gmra.mxu1 %vm243_vm1, %v176_v10  ;;  %v2703_v15 = vld [vmem:[%s3119_s7 + $0x1a1] sm:$0xff]  ;;  %v3147_v19 = vld [vmem:[%s3119_s7 + $0x1b1] sm:$0xff] }
  0x15   : > { %2736 = vmatmul.msk.f32.vlgmr.msra.gmra.mxu3 %vm243_vm1, %v2702_v11  ;;  %v2637_v13 = vld [vmem:[%s3119_s7 + $0x1a0] sm:$0xff]  ;;  %v3144_v18 = vld [vmem:[%s3119_s7 + $0x18] sm:$0xff]  ;;  %v3181_v25 = vld [vmem:[%s3119_s7 + $0x1c8] sm:$0xff] }
  0x16   : > { %v3138_v16 = vld [vmem:[%s3119_s7 + $0x19] sm:$0xff]  ;;  %v3158_v20 = vld [vmem:[%s3119_s7 + $0x21] sm:$0xff]  ;;  %v3178_v24 = vld [vmem:[%s3119_s7 + $0x31] sm:$0xff] }
  0x17   : > { %v3161_v21 = vld [vmem:[%s3119_s7 + $0x1b8] sm:$0xff]  ;;  %v3164_v22 = vld [vmem:[%s3119_s7 + $0x20] sm:$0xff]  ;;  %v3184_v26 = vld [vmem:[%s3119_s7 + $0x30] sm:$0xff] }
  0x18   : > { %v3167_v23 = vld [vmem:[%s3119_s7 + $0x1b9] sm:$0xff]  ;;  %v3187_v27 = vld [vmem:[%s3119_s7 + $0x1c9] sm:$0xff]  ;;  %v3207_v31 = vld [vmem:[%s3119_s7 + $0x1d1] sm:$0xff] }
  0x19   : > { %v3198_v28 = vld [vmem:[%s3119_s7 + $0x39] sm:$0xff]  ;;  %v3201_v29 = vld [vmem:[%s3119_s7 + $0x1d0] sm:$0xff]  ;;  %v3224_v34 = vld [vmem:[%s3119_s7 + $0x48] sm:$0xff] }
  0x1a   : > { %v3204_v30 = vld [vmem:[%s3119_s7 + $0x38] sm:$0xff]  ;;  %v3218_v32 = vld [vmem:[%s3119_s7 + $0x49] sm:$0xff]  ;;  %v3221_v33 = vld [vmem:[%s3119_s7 + $0x1e0] sm:$0xff] }
  0x1b   : > { %2572 = vmatmul.msk.f32.gmra.mxu0 %vm243_vm1, %v210_v12  ;;  %2671 = vmatmul.msk.f32.gmra.mxu2 %vm243_vm1, %v2637_v13  ;;  %v3227_v35 = vld [vmem:[%s3119_s7 + $0x1e1] sm:$0xff]  ;;  %v3238_v36 = vld [vmem:[%s3119_s7 + $0x51] sm:$0xff]  ;;  %v3247_v39 = vld [vmem:[%s3119_s7 + $0x1e9] sm:$0xff] }
  0x1c   : > { %2605 = vmatmul.msk.f32.gmra.mxu1 %vm243_vm1, %v177_v14  ;;  %v3241_v37 = vld [vmem:[%s3119_s7 + $0x1e8] sm:$0xff]  ;;  %v3244_v38 = vld [vmem:[%s3119_s7 + $0x50] sm:$0xff]  ;;  %v3261_v41 = vld [vmem:[%s3119_s7 + $0x1f8] sm:$0xff] }
  0x1d   : > { %2737 = vmatmul.msk.f32.gmra.mxu3 %vm243_vm1, %v2703_v15  ;;  %v3258_v40 = vld [vmem:[%s3119_s7 + $0x61] sm:$0xff]  ;;  %v3267_v43 = vld [vmem:[%s3119_s7 + $0x1f9] sm:$0xff]  ;;  %v3278_v44 = vld [vmem:[%s3119_s7 + $0x69] sm:$0xff] }
  0x1e   : > { %v3264_v42 = vld [vmem:[%s3119_s7 + $0x60] sm:$0xff]  ;;  %v3284_v46 = vld [vmem:[%s3119_s7 + $0x68] sm:$0xff]  ;;  %v3301_v49 = vld [vmem:[%s3119_s7 + $0x210] sm:$0xff] }
  0x1f   : > { %v3281_v45 = vld [vmem:[%s3119_s7 + $0x200] sm:$0xff]  ;;  %v3304_v50 = vld [vmem:[%s3119_s7 + $0x78] sm:$0xff]  ;;  %v3341_v57 = vld [vmem:[%s3119_s7 + $0x228] sm:$0xff] }
  0x20   : > { %v3287_v47 = vld [vmem:[%s3119_s7 + $0x201] sm:$0xff]  ;;  %v3298_v48 = vld [vmem:[%s3119_s7 + $0x79] sm:$0xff]  ;;  %v3307_v51 = vld [vmem:[%s3119_s7 + $0x211] sm:$0xff] }
  0x21   : > { %v3318_v52 = vld [vmem:[%s3119_s7 + $0x81] sm:$0xff]  ;;  %v3321_v53 = vld [vmem:[%s3119_s7 + $0x218] sm:$0xff]  ;;  %v3344_v58 = vld [vmem:[%s3119_s7 + $0x90] sm:$0xff] }
  0x22   : > { %v3324_v54 = vld [vmem:[%s3119_s7 + $0x80] sm:$0xff]  ;;  %v3338_v56 = vld [vmem:[%s3119_s7 + $0x91] sm:$0xff]  ;;  %v3347_v59 = vld [vmem:[%s3119_s7 + $0x229] sm:$0xff] }
  0x23   : > { %2573 = vmatmul.msk.f32.gmra.mxu0 %vm243_vm1, %v3138_v16  ;;  %2672 = vmatmul.msk.f32.gmra.mxu2 %vm243_vm1, %v3141_v17  ;;  %v3327_v55 = vld [vmem:[%s3119_s7 + $0x219] sm:$0xff]  ;;  %v3361_v61 = vld [vmem:[%s3119_s7 + $0x230] sm:$0xff]  ;;  %v3384_v2 = vld [vmem:[%s3119_s7 + $0xa8] sm:$0xff] }
  0x24   : > { %2606 = vmatmul.msk.f32.gmra.mxu1 %vm243_vm1, %v3144_v18  ;;  %v3358_v60 = vld [vmem:[%s3119_s7 + $0x99] sm:$0xff]  ;;  %v3367_v63 = vld [vmem:[%s3119_s7 + $0x231] sm:$0xff]  ;;  %v3378_v0 = vld [vmem:[%s3119_s7 + $0xa9] sm:$0xff]  ;;  %4212 = vst [vmem:[#allocation5_spill] sm:$0xff] %v3384_v2 }
  0x25   : > { %2738 = vmatmul.msk.f32.gmra.mxu3 %vm243_vm1, %v3147_v19  ;;  %v3364_v62 = vld [vmem:[%s3119_s7 + $0x98] sm:$0xff]  ;;  %4209 = vst [vmem:[#allocation2_spill] sm:$0xff] %v3367_v63  ;;  %v3381_v1 = vld [vmem:[%s3119_s7 + $0x240] sm:$0xff]  ;;  %v3401_v5 = vld [vmem:[%s3119_s7 + $0x248] sm:$0xff] }
  0x26   : > { %4210 = vst [vmem:[#allocation3_spill] sm:$0xff] %v3378_v0  ;;  %v3387_v3 = vld [vmem:[%s3119_s7 + $0x241] sm:$0xff]  ;;  %v3398_v4 = vld [vmem:[%s3119_s7 + $0xb1] sm:$0xff]  ;;  %v3407_v7 = vld [vmem:[%s3119_s7 + $0x249] sm:$0xff] }
  0x27   : > { %4211 = vst [vmem:[#allocation4_spill] sm:$0xff] %v3381_v1  ;;  %v3404_v6 = vld [vmem:[%s3119_s7 + $0xb0] sm:$0xff]  ;;  %v3418_v9 = vld [vmem:[%s3119_s7 + $0xc1] sm:$0xff]  ;;  %v3421_v10 = vld [vmem:[%s3119_s7 + $0x258] sm:$0xff] }
  0x28   : > { %4213 = vst [vmem:[#allocation6_spill] sm:$0xff] %v3387_v3  ;;  %v3424_v12 = vld [vmem:[%s3119_s7 + $0xc0] sm:$0xff] }
  0x29   : > { %4214 = vst [vmem:[#allocation7_spill] sm:$0xff] %v3398_v4  ;;  %v3427_v13 = vld [vmem:[%s3119_s7 + $0x259] sm:$0xff] }
  0x2a   : > { %4215 = vst [vmem:[#allocation8_spill] sm:$0xff] %v3401_v5 }
  0x2b   : > { %2574 = vmatmul.msk.f32.gmra.mxu0 %vm243_vm1, %v3158_v20  ;;  %2673 = vmatmul.msk.f32.gmra.mxu2 %vm243_vm1, %v3161_v21  ;;  %4216 = vst [vmem:[#allocation9_spill] sm:$0xff] %v3404_v6 }
  0x2c   : > { %2607 = vmatmul.msk.f32.gmra.mxu1 %vm243_vm1, %v3164_v22  ;;  %4217 = vst [vmem:[#allocation10_spill] sm:$0xff] %v3407_v7 }
  0x2d   : > { %2739 = vmatmul.msk.f32.gmra.mxu3 %vm243_vm1, %v3167_v23  ;;  %4218 = vst [vmem:[#allocation11_spill] sm:$0xff] %v3418_v9 }
  0x2e   : > { %4219 = vst [vmem:[#allocation12_spill] sm:$0xff] %v3421_v10 }
  0x2f   : > { %4220 = vst [vmem:[#allocation13_spill] sm:$0xff] %v3424_v12 }
  0x30   : > { %4221 = vst [vmem:[#allocation14_spill] sm:$0xff] %v3427_v13 }
  0x33   : > { %2575 = vmatmul.msk.f32.gmra.mxu0 %vm243_vm1, %v3178_v24  ;;  %2674 = vmatmul.msk.f32.gmra.mxu2 %vm243_vm1, %v3181_v25 }
  0x34   : > { %2608 = vmatmul.msk.f32.gmra.mxu1 %vm243_vm1, %v3184_v26 }
  0x35   : > { %2740 = vmatmul.msk.f32.gmra.mxu3 %vm243_vm1, %v3187_v27 }
  0x3b   : > { %2576 = vmatmul.msk.f32.gmra.mxu0 %vm243_vm1, %v3198_v28  ;;  %2675 = vmatmul.msk.f32.gmra.mxu2 %vm243_vm1, %v3201_v29 }
  0x3c   : > { %2609 = vmatmul.msk.f32.gmra.mxu1 %vm243_vm1, %v3204_v30 }
  0x3d   : > { %2741 = vmatmul.msk.f32.gmra.mxu3 %vm243_vm1, %v3207_v31 }
  0x43   : > { %2577 = vmatmul.msk.f32.gmra.mxu0 %vm243_vm1, %v3218_v32  ;;  %2676 = vmatmul.msk.f32.gmra.mxu2 %vm243_vm1, %v3221_v33 }
  0x44   : > { %2610 = vmatmul.msk.f32.gmra.mxu1 %vm243_vm1, %v3224_v34 }
  0x45   : > { %2742 = vmatmul.msk.f32.gmra.mxu3 %vm243_vm1, %v3227_v35 }
  0x4b   : > { %2578 = vmatmul.msk.f32.gmra.mxu0 %vm243_vm1, %v3238_v36  ;;  %2677 = vmatmul.msk.f32.gmra.mxu2 %vm243_vm1, %v3241_v37 }
  0x4c   : > { %2611 = vmatmul.msk.f32.gmra.mxu1 %vm243_vm1, %v3244_v38 }
  0x4d   : > { %2743 = vmatmul.msk.f32.gmra.mxu3 %vm243_vm1, %v3247_v39 }
  0x53   : > { %2579 = vmatmul.msk.f32.gmra.mxu0 %vm243_vm1, %v3258_v40  ;;  %2678 = vmatmul.msk.f32.gmra.mxu2 %vm243_vm1, %v3261_v41 }
  0x54   : > { %2612 = vmatmul.msk.f32.gmra.mxu1 %vm243_vm1, %v3264_v42 }
  0x55   : > { %2744 = vmatmul.msk.f32.gmra.mxu3 %vm243_vm1, %v3267_v43 }
  0x5b   : > { %2580 = vmatmul.msk.f32.gmra.mxu0 %vm243_vm1, %v3278_v44  ;;  %2679 = vmatmul.msk.f32.gmra.mxu2 %vm243_vm1, %v3281_v45 }
  0x5c   : > { %2613 = vmatmul.msk.f32.gmra.mxu1 %vm243_vm1, %v3284_v46 }
  0x5d   : > { %2745 = vmatmul.msk.f32.gmra.mxu3 %vm243_vm1, %v3287_v47 }
  0x63   : > { %2581 = vmatmul.msk.f32.gmra.mxu0 %vm243_vm1, %v3298_v48  ;;  %2680 = vmatmul.msk.f32.gmra.mxu2 %vm243_vm1, %v3301_v49 }
  0x64   : > { %2614 = vmatmul.msk.f32.gmra.mxu1 %vm243_vm1, %v3304_v50 }
  0x65   : > { %2746 = vmatmul.msk.f32.gmra.mxu3 %vm243_vm1, %v3307_v51 }
  0x6b   : > { %2582 = vmatmul.msk.f32.gmra.mxu0 %vm243_vm1, %v3318_v52  ;;  %2681 = vmatmul.msk.f32.gmra.mxu2 %vm243_vm1, %v3321_v53 }
  0x6c   : > { %2615 = vmatmul.msk.f32.gmra.mxu1 %vm243_vm1, %v3324_v54 }
  0x6d   : > { %2747 = vmatmul.msk.f32.gmra.mxu3 %vm243_vm1, %v3327_v55 }
  0x73   : > { %2583 = vmatmul.msk.f32.gmra.mxu0 %vm243_vm1, %v3338_v56  ;;  %2682 = vmatmul.msk.f32.gmra.mxu2 %vm243_vm1, %v3341_v57 }
  0x74   : > { %2616 = vmatmul.msk.f32.gmra.mxu1 %vm243_vm1, %v3344_v58 }
  0x75   : > { %2748 = vmatmul.msk.f32.gmra.mxu3 %vm243_vm1, %v3347_v59 }
  0x7b   : > { %2584 = vmatmul.msk.f32.gmra.mxu0 %vm243_vm1, %v3358_v60  ;;  %2683 = vmatmul.msk.f32.gmra.mxu2 %vm243_vm1, %v3361_v61 }
  0x7c   : > { %2617 = vmatmul.msk.f32.gmra.mxu1 %vm243_vm1, %v3364_v62 }
  0x7d   : > { %2749 = vmatmul.msk.f32.gmra.mxu3 %vm243_vm1, %v3367_v63  ;;  %v2733_v63 = vld [vmem:[%s3119_s7 + $0x309] sm:$0xff] }
  0x83   : > { %2585 = vmatmul.msk.f32.gmra.mxu0 %vm243_vm1, %v3378_v0  ;;  %2684 = vmatmul.msk.f32.gmra.mxu2 %vm243_vm1, %v3381_v1  ;;  %v3446_v0 = vld [vmem:[%s3119_s7 + $0xc8] sm:$0xff] }
  0x84   : > { %2618 = vmatmul.msk.f32.gmra.mxu1 %vm243_vm1, %v3384_v2  ;;  %4225 = vst [vmem:[#allocation18_spill] sm:$0xff] %v3446_v0  ;;  %v2730_v1 = vld [vmem:[%s3119_s7 + $0x2e9] sm:$0xff] }
  0x85   : > { %2750 = vmatmul.msk.f32.gmra.mxu3 %vm243_vm1, %v3387_v3  ;;  %v3441_v3 = vld [vmem:[%s3119_s7 + $0x260] sm:$0xff]  ;;  %v207_v2 = vld [vmem:[%s3119_s7 + $0x170] sm:$0xff] }
  0x86   : > { %4223 = vst [vmem:[#allocation16_spill] sm:$0xff] %v3441_v3 }
  0x8b   : > { %2586 = vmatmul.msk.f32.gmra.mxu0 %vm243_vm1, %v3398_v4  ;;  %2685 = vmatmul.msk.f32.gmra.mxu2 %vm243_vm1, %v3401_v5 }
  0x8c   : > { %2619 = vmatmul.msk.f32.gmra.mxu1 %vm243_vm1, %v3404_v6  ;;  %v3438_v6 = vld [vmem:[%s3119_s7 + $0xc9] sm:$0xff] }
  0x8d   : > { %2751 = vmatmul.msk.f32.gmra.mxu3 %vm243_vm1, %v3407_v7  ;;  %4222 = vst [vmem:[#allocation15_spill] sm:$0xff] %v3438_v6 }
  0x90   : > { %v361_v8 = vpop.f32.mrf.mxu0 }
  0x91   : > { %v573_v11 = vpop.f32.mrf.mxu1 }
  0x92   : > { %v574_v14 = vadd.f32 %v573_v11, %v361_v8 }
  0x93   : > { %2587 = vmatmul.msk.f32.gmra.mxu0 %vm243_vm1, %v3418_v9  ;;  %2686 = vmatmul.msk.f32.gmra.mxu2 %vm243_vm1, %v3421_v10 }
  0x94   : > { %2620 = vmatmul.msk.f32.gmra.mxu1 %vm243_vm1, %v3424_v12  ;;  %v3449_v12 = vld [vmem:[%s3119_s7 + $0x261] sm:$0xff] }
  0x95   : > { %2752 = vmatmul.msk.f32.gmra.mxu3 %vm243_vm1, %v3427_v13  ;;  %4226 = vst [vmem:[#allocation19_spill] sm:$0xff] %v3449_v12  ;;  %v3468_v13 = vld [vmem:[%s3119_s7 + $0xd8] sm:$0xff] }
  0x96   : > { %v820_v15 = vpop.f32.mrf.mxu2  ;;  %4230 = vst [vmem:[#allocation23_spill] sm:$0xff] %v3468_v13 }
  0x97   : > { %v916_v7 = vadd.f32 %v820_v15, %v574_v14  ;;  %v3460_v15 = vld [vmem:[%s3119_s7 + $0xd9] sm:$0xff] }
  0x98   : > { %v1098_v4 = vpop.f32.mrf.mxu3  ;;  %v364_v5 = vpop.f32.mrf.mxu0  ;;  %4227 = vst [vmem:[#allocation20_spill] sm:$0xff] %v3460_v15 }
  0x99   : > { %v3443_v9 = vadd.f32 %v1098_v4, %v916_v7  ;;  %v576_v10 = vpop.f32.mrf.mxu1 }
  0x9a   : > { %v577_v4 = vadd.f32 %v576_v10, %v364_v5 }
  0x9b   : > { %4224 = vst [vmem:[#allocation17_spill] sm:$0xff] %v3443_v9  ;;  %2588 = vmatmul.msk.f32.gmra.mxu0 %vm243_vm1, %v3438_v6  ;;  %2687 = vmatmul.msk.f32.gmra.mxu2 %vm243_vm1, %v3441_v3  ;;  %v3463_v9 = vld [vmem:[%s3119_s7 + $0x270] sm:$0xff] }
  0x9c   : > { %2621 = vmatmul.msk.f32.gmra.mxu1 %vm243_vm1, %v3446_v0  ;;  %4228 = vst [vmem:[#allocation21_spill] sm:$0xff] %v3463_v9  ;;  %v3471_v0 = vld [vmem:[%s3119_s7 + $0x271] sm:$0xff] }
  0x9d   : > { %2753 = vmatmul.msk.f32.gmra.mxu3 %vm243_vm1, %v3449_v12  ;;  %4231 = vst [vmem:[#allocation24_spill] sm:$0xff] %v3471_v0  ;;  %v3490_v12 = vld [vmem:[%s3119_s7 + $0xe0] sm:$0xff] }
  0x9e   : > { %v823_v7 = vpop.f32.mrf.mxu2  ;;  %4235 = vst [vmem:[#allocation28_spill] sm:$0xff] %v3490_v12 }
  0x9f   : > { %v917_v8 = vadd.f32 %v823_v7, %v577_v4 }
  0xa0   : > { %v1101_v11 = vpop.f32.mrf.mxu3  ;;  %v367_v14 = vpop.f32.mrf.mxu0 }
  0xa1   : > { %v3465_v6 = vadd.f32 %v1101_v11, %v917_v8  ;;  %v579_v3 = vpop.f32.mrf.mxu1  ;;  %v3482_v11 = vld [vmem:[%s3119_s7 + $0xe1] sm:$0xff] }
  0xa2   : > { %v580_v5 = vadd.f32 %v579_v3, %v367_v14  ;;  %4232 = vst [vmem:[#allocation25_spill] sm:$0xff] %v3482_v11 }
  0xa3   : > { %4229 = vst [vmem:[#allocation22_spill] sm:$0xff] %v3465_v6  ;;  %2589 = vmatmul.msk.f32.gmra.mxu0 %vm243_vm1, %v3460_v15  ;;  %2688 = vmatmul.msk.f32.gmra.mxu2 %vm243_vm1, %v3463_v9  ;;  %v3485_v6 = vld [vmem:[%s3119_s7 + $0x278] sm:$0xff] }
  0xa4   : > { %2622 = vmatmul.msk.f32.gmra.mxu1 %vm243_vm1, %v3468_v13  ;;  %4233 = vst [vmem:[#allocation26_spill] sm:$0xff] %v3485_v6  ;;  %v3493_v13 = vld [vmem:[%s3119_s7 + $0x279] sm:$0xff] }
  0xa5   : > { %2754 = vmatmul.msk.f32.gmra.mxu3 %vm243_vm1, %v3471_v0  ;;  %4236 = vst [vmem:[#allocation29_spill] sm:$0xff] %v3493_v13  ;;  %v3512_v0 = vld [vmem:[%s3119_s7 + $0xf0] sm:$0xff] }
  0xa6   : > { %v826_v10 = vpop.f32.mrf.mxu2  ;;  %4240 = vst [vmem:[#allocation33_spill] sm:$0xff] %v3512_v0 }
  0xa7   : > { %v918_v4 = vadd.f32 %v826_v10, %v580_v5 }
  0xa8   : > { %v1104_v7 = vpop.f32.mrf.mxu3  ;;  %v370_v8 = vpop.f32.mrf.mxu0 }
  0xa9   : > { %v3487_v15 = vadd.f32 %v1104_v7, %v918_v4  ;;  %v582_v9 = vpop.f32.mrf.mxu1  ;;  %v3504_v7 = vld [vmem:[%s3119_s7 + $0xf1] sm:$0xff] }
  0xaa   : > { %v583_v3 = vadd.f32 %v582_v9, %v370_v8  ;;  %4237 = vst [vmem:[#allocation30_spill] sm:$0xff] %v3504_v7 }
  0xab   : > { %4234 = vst [vmem:[#allocation27_spill] sm:$0xff] %v3487_v15  ;;  %2590 = vmatmul.msk.f32.gmra.mxu0 %vm243_vm1, %v3482_v11  ;;  %2689 = vmatmul.msk.f32.gmra.mxu2 %vm243_vm1, %v3485_v6  ;;  %v3507_v15 = vld [vmem:[%s3119_s7 + $0x288] sm:$0xff] }
  0xac   : > { %2623 = vmatmul.msk.f32.gmra.mxu1 %vm243_vm1, %v3490_v12  ;;  %4238 = vst [vmem:[#allocation31_spill] sm:$0xff] %v3507_v15  ;;  %v3515_v12 = vld [vmem:[%s3119_s7 + $0x289] sm:$0xff] }
  0xad   : > { %2755 = vmatmul.msk.f32.gmra.mxu3 %vm243_vm1, %v3493_v13  ;;  %4241 = vst [vmem:[#allocation34_spill] sm:$0xff] %v3515_v12  ;;  %v3534_v13 = vld [vmem:[%s3119_s7 + $0xf8] sm:$0xff] }
  0xae   : > { %v829_v14 = vpop.f32.mrf.mxu2  ;;  %4245 = vst [vmem:[#allocation38_spill] sm:$0xff] %v3534_v13 }
  0xaf   : > { %v919_v5 = vadd.f32 %v829_v14, %v583_v3 }
  0xb0   : > { %v1107_v10 = vpop.f32.mrf.mxu3  ;;  %v373_v4 = vpop.f32.mrf.mxu0 }
  0xb1   : > { %v3509_v11 = vadd.f32 %v1107_v10, %v919_v5  ;;  %v585_v6 = vpop.f32.mrf.mxu1  ;;  %v3526_v10 = vld [vmem:[%s3119_s7 + $0xf9] sm:$0xff] }
  0xb2   : > { %v586_v9 = vadd.f32 %v585_v6, %v373_v4  ;;  %4242 = vst [vmem:[#allocation35_spill] sm:$0xff] %v3526_v10 }
  0xb3   : > { %4239 = vst [vmem:[#allocation32_spill] sm:$0xff] %v3509_v11  ;;  %2591 = vmatmul.msk.f32.gmra.mxu0 %vm243_vm1, %v3504_v7  ;;  %2690 = vmatmul.msk.f32.gmra.mxu2 %vm243_vm1, %v3507_v15  ;;  %v3529_v11 = vld [vmem:[%s3119_s7 + $0x290] sm:$0xff] }
  0xb4   : > { %2624 = vmatmul.msk.f32.gmra.mxu1 %vm243_vm1, %v3512_v0  ;;  %4243 = vst [vmem:[#allocation36_spill] sm:$0xff] %v3529_v11  ;;  %v3537_v0 = vld [vmem:[%s3119_s7 + $0x291] sm:$0xff] }
  0xb5   : > { %2756 = vmatmul.msk.f32.gmra.mxu3 %vm243_vm1, %v3515_v12  ;;  %4246 = vst [vmem:[#allocation39_spill] sm:$0xff] %v3537_v0  ;;  %v3556_v12 = vld [vmem:[%s3119_s7 + $0x108] sm:$0xff] }
  0xb6   : > { %v832_v8 = vpop.f32.mrf.mxu2  ;;  %4250 = vst [vmem:[#allocation43_spill] sm:$0xff] %v3556_v12 }
  0xb7   : > { %v920_v3 = vadd.f32 %v832_v8, %v586_v9 }
  0xb8   : > { %v1110_v14 = vpop.f32.mrf.mxu3  ;;  %v376_v5 = vpop.f32.mrf.mxu0 }
  0xb9   : > { %v3531_v7 = vadd.f32 %v1110_v14, %v920_v3  ;;  %v588_v15 = vpop.f32.mrf.mxu1  ;;  %v3548_v14 = vld [vmem:[%s3119_s7 + $0x109] sm:$0xff] }
  0xba   : > { %v589_v6 = vadd.f32 %v588_v15, %v376_v5  ;;  %4247 = vst [vmem:[#allocation40_spill] sm:$0xff] %v3548_v14 }
  0xbb   : > { %4244 = vst [vmem:[#allocation37_spill] sm:$0xff] %v3531_v7  ;;  %2592 = vmatmul.msk.f32.gmra.mxu0 %vm243_vm1, %v3526_v10  ;;  %2691 = vmatmul.msk.f32.gmra.mxu2 %vm243_vm1, %v3529_v11  ;;  %v3551_v7 = vld [vmem:[%s3119_s7 + $0x2a0] sm:$0xff] }
  0xbc   : > { %2625 = vmatmul.msk.f32.gmra.mxu1 %vm243_vm1, %v3534_v13  ;;  %4248 = vst [vmem:[#allocation41_spill] sm:$0xff] %v3551_v7  ;;  %v3559_v13 = vld [vmem:[%s3119_s7 + $0x2a1] sm:$0xff] }
  0xbd   : > { %2757 = vmatmul.msk.f32.gmra.mxu3 %vm243_vm1, %v3537_v0  ;;  %4251 = vst [vmem:[#allocation44_spill] sm:$0xff] %v3559_v13  ;;  %v3578_v0 = vld [vmem:[%s3119_s7 + $0x110] sm:$0xff] }
  0xbe   : > { %v835_v4 = vpop.f32.mrf.mxu2  ;;  %4255 = vst [vmem:[#allocation48_spill] sm:$0xff] %v3578_v0 }
  0xbf   : > { %v921_v9 = vadd.f32 %v835_v4, %v589_v6 }
  0xc0   : > { %v1113_v8 = vpop.f32.mrf.mxu3  ;;  %v379_v3 = vpop.f32.mrf.mxu0 }
  0xc1   : > { %v3553_v10 = vadd.f32 %v1113_v8, %v921_v9  ;;  %v591_v11 = vpop.f32.mrf.mxu1  ;;  %v3570_v8 = vld [vmem:[%s3119_s7 + $0x111] sm:$0xff] }
  0xc2   : > { %v592_v15 = vadd.f32 %v591_v11, %v379_v3  ;;  %4252 = vst [vmem:[#allocation45_spill] sm:$0xff] %v3570_v8 }
  0xc3   : > { %4249 = vst [vmem:[#allocation42_spill] sm:$0xff] %v3553_v10  ;;  %2593 = vmatmul.msk.f32.gmra.mxu0 %vm243_vm1, %v3548_v14  ;;  %2692 = vmatmul.msk.f32.gmra.mxu2 %vm243_vm1, %v3551_v7  ;;  %v3573_v10 = vld [vmem:[%s3119_s7 + $0x2a8] sm:$0xff] }
  0xc4   : > { %2626 = vmatmul.msk.f32.gmra.mxu1 %vm243_vm1, %v3556_v12  ;;  %4253 = vst [vmem:[#allocation46_spill] sm:$0xff] %v3573_v10  ;;  %v3581_v12 = vld [vmem:[%s3119_s7 + $0x2a9] sm:$0xff] }
  0xc5   : > { %2758 = vmatmul.msk.f32.gmra.mxu3 %vm243_vm1, %v3559_v13  ;;  %4256 = vst [vmem:[#allocation49_spill] sm:$0xff] %v3581_v12  ;;  %v3600_v13 = vld [vmem:[%s3119_s7 + $0x120] sm:$0xff] }
  0xc6   : > { %v838_v5 = vpop.f32.mrf.mxu2  ;;  %4260 = vst [vmem:[#allocation53_spill] sm:$0xff] %v3600_v13 }
  0xc7   : > { %v922_v6 = vadd.f32 %v838_v5, %v592_v15 }
  0xc8   : > { %v1116_v4 = vpop.f32.mrf.mxu3  ;;  %v382_v9 = vpop.f32.mrf.mxu0 }
  0xc9   : > { %v3575_v14 = vadd.f32 %v1116_v4, %v922_v6  ;;  %v594_v7 = vpop.f32.mrf.mxu1  ;;  %v3592_v4 = vld [vmem:[%s3119_s7 + $0x121] sm:$0xff] }
  0xca   : > { %v595_v11 = vadd.f32 %v594_v7, %v382_v9  ;;  %4257 = vst [vmem:[#allocation50_spill] sm:$0xff] %v3592_v4 }
  0xcb   : > { %4254 = vst [vmem:[#allocation47_spill] sm:$0xff] %v3575_v14  ;;  %2594 = vmatmul.msk.f32.gmra.mxu0 %vm243_vm1, %v3570_v8  ;;  %2693 = vmatmul.msk.f32.gmra.mxu2 %vm243_vm1, %v3573_v10  ;;  %v3595_v14 = vld [vmem:[%s3119_s7 + $0x2b8] sm:$0xff] }
  0xcc   : > { %2627 = vmatmul.msk.f32.gmra.mxu1 %vm243_vm1, %v3578_v0  ;;  %4258 = vst [vmem:[#allocation51_spill] sm:$0xff] %v3595_v14  ;;  %v3603_v0 = vld [vmem:[%s3119_s7 + $0x2b9] sm:$0xff] }
  0xcd   : > { %2759 = vmatmul.msk.f32.gmra.mxu3 %vm243_vm1, %v3581_v12  ;;  %4261 = vst [vmem:[#allocation54_spill] sm:$0xff] %v3603_v0  ;;  %v3622_v12 = vld [vmem:[%s3119_s7 + $0x128] sm:$0xff] }
  0xce   : > { %v841_v3 = vpop.f32.mrf.mxu2  ;;  %4265 = vst [vmem:[#allocation58_spill] sm:$0xff] %v3622_v12 }
  0xcf   : > { %v923_v15 = vadd.f32 %v841_v3, %v595_v11 }
  0xd0   : > { %v1119_v5 = vpop.f32.mrf.mxu3  ;;  %v385_v6 = vpop.f32.mrf.mxu0 }
  0xd1   : > { %v3597_v8 = vadd.f32 %v1119_v5, %v923_v15  ;;  %v597_v10 = vpop.f32.mrf.mxu1  ;;  %v3614_v5 = vld [vmem:[%s3119_s7 + $0x129] sm:$0xff] }
  0xd2   : > { %v598_v7 = vadd.f32 %v597_v10, %v385_v6  ;;  %4262 = vst [vmem:[#allocation55_spill] sm:$0xff] %v3614_v5 }
  0xd3   : > { %4259 = vst [vmem:[#allocation52_spill] sm:$0xff] %v3597_v8  ;;  %2595 = vmatmul.msk.f32.gmra.mxu0 %vm243_vm1, %v3592_v4  ;;  %2694 = vmatmul.msk.f32.gmra.mxu2 %vm243_vm1, %v3595_v14  ;;  %v3617_v8 = vld [vmem:[%s3119_s7 + $0x2c0] sm:$0xff] }
  0xd4   : > { %2628 = vmatmul.msk.f32.gmra.mxu1 %vm243_vm1, %v3600_v13  ;;  %4263 = vst [vmem:[#allocation56_spill] sm:$0xff] %v3617_v8  ;;  %v3625_v13 = vld [vmem:[%s3119_s7 + $0x2c1] sm:$0xff] }
  0xd5   : > { %2760 = vmatmul.msk.f32.gmra.mxu3 %vm243_vm1, %v3603_v0  ;;  %4266 = vst [vmem:[#allocation59_spill] sm:$0xff] %v3625_v13  ;;  %v3644_v0 = vld [vmem:[%s3119_s7 + $0x138] sm:$0xff] }
  0xd6   : > { %v844_v9 = vpop.f32.mrf.mxu2  ;;  %4270 = vst [vmem:[#allocation63_spill] sm:$0xff] %v3644_v0 }
  0xd7   : > { %v924_v11 = vadd.f32 %v844_v9, %v598_v7 }
  0xd8   : > { %v1122_v3 = vpop.f32.mrf.mxu3  ;;  %v388_v15 = vpop.f32.mrf.mxu0 }
  0xd9   : > { %v3619_v4 = vadd.f32 %v1122_v3, %v924_v11  ;;  %v600_v14 = vpop.f32.mrf.mxu1  ;;  %v3636_v3 = vld [vmem:[%s3119_s7 + $0x139] sm:$0xff] }
  0xda   : > { %v601_v10 = vadd.f32 %v600_v14, %v388_v15  ;;  %4267 = vst [vmem:[#allocation60_spill] sm:$0xff] %v3636_v3 }
  0xdb   : > { %4264 = vst [vmem:[#allocation57_spill] sm:$0xff] %v3619_v4  ;;  %2596 = vmatmul.msk.f32.gmra.mxu0 %vm243_vm1, %v3614_v5  ;;  %2695 = vmatmul.msk.f32.gmra.mxu2 %vm243_vm1, %v3617_v8  ;;  %v3639_v4 = vld [vmem:[%s3119_s7 + $0x2d0] sm:$0xff] }
  0xdc   : > { %2629 = vmatmul.msk.f32.gmra.mxu1 %vm243_vm1, %v3622_v12  ;;  %4268 = vst [vmem:[#allocation61_spill] sm:$0xff] %v3639_v4  ;;  %v3647_v12 = vld [vmem:[%s3119_s7 + $0x2d1] sm:$0xff] }
  0xdd   : > { %2761 = vmatmul.msk.f32.gmra.mxu3 %vm243_vm1, %v3625_v13  ;;  %4271 = vst [vmem:[#allocation64_spill] sm:$0xff] %v3647_v12 }
  0xde   : > { %v847_v6 = vpop.f32.mrf.mxu2 }
  0xdf   : > { %v925_v7 = vadd.f32 %v847_v6, %v601_v10 }
  0xe0   : > { %v1125_v9 = vpop.f32.mrf.mxu3  ;;  %v391_v11 = vpop.f32.mrf.mxu0 }
  0xe1   : > { %v3641_v5 = vadd.f32 %v1125_v9, %v925_v7  ;;  %v603_v8 = vpop.f32.mrf.mxu1  ;;  %v236_v9 = vld [vmem:[%s3119_s7 + $0x141] sm:$0xff] }
  0xe2   : > { %v604_v14 = vadd.f32 %v603_v8, %v391_v11 }
  0xe3   : > { %4269 = vst [vmem:[#allocation62_spill] sm:$0xff] %v3641_v5  ;;  %2597 = vmatmul.msk.f32.gmra.mxu0 %vm243_vm1, %v3636_v3  ;;  %2696 = vmatmul.msk.f32.gmra.mxu2 %vm243_vm1, %v3639_v4  ;;  %v3659_v5 = vld [vmem:[%s3119_s7 + $0x2d8] sm:$0xff]  ;;  %v3664_v4 = vld [vmem:[%s3119_s7 + $0x140] sm:$0xff] }
  0xe4   : > { %2630 = vmatmul.msk.f32.gmra.mxu1 %vm243_vm1, %v3644_v0  ;;  %4272 = vst [vmem:[#allocation65_spill] sm:$0xff] %v3659_v5  ;;  %v3667_v0 = vld [vmem:[%s3119_s7 + $0x2d9] sm:$0xff] }
  0xe5   : > { %2762 = vmatmul.msk.f32.gmra.mxu3 %vm243_vm1, %v3647_v12  ;;  %4274 = vst [vmem:[#allocation67_spill] sm:$0xff] %v3664_v4 }
  0xe6   : > { %v850_v15 = vpop.f32.mrf.mxu2  ;;  %4275 = vst [vmem:[#allocation68_spill] sm:$0xff] %v3667_v0 }
  0xe7   : > { %v926_v10 = vadd.f32 %v850_v15, %v604_v14 }
  0xe8   : > { %v1128_v6 = vpop.f32.mrf.mxu3  ;;  %v394_v7 = vpop.f32.mrf.mxu0 }
  0xe9   : > { %v3661_v3 = vadd.f32 %v1128_v6, %v926_v10  ;;  %v606_v13 = vpop.f32.mrf.mxu1  ;;  %v237_v6 = vld [vmem:[%s3119_s7 + $0x151] sm:$0xff] }
  0xea   : > { %v607_v8 = vadd.f32 %v606_v13, %v394_v7 }
  0xeb   : > { %4273 = vst [vmem:[#allocation66_spill] sm:$0xff] %v3661_v3  ;;  %2598 = vmatmul.msk.f32.gmra.mxu0 %vm243_vm1, %v236_v9  ;;  %2697 = vmatmul.msk.f32.gmra.mxu2 %vm243_vm1, %v3659_v5  ;;  %v2664_v3 = vld [vmem:[%s3119_s7 + $0x2e8] sm:$0xff]  ;;  %v204_v5 = vld [vmem:[%s3119_s7 + $0x150] sm:$0xff] }
  0xec   : > { %2631 = vmatmul.msk.f32.gmra.mxu1 %vm243_vm1, %v3664_v4 }
  0xed   : > { %2763 = vmatmul.msk.f32.gmra.mxu3 %vm243_vm1, %v3667_v0 }
  0xee   : > { %v853_v11 = vpop.f32.mrf.mxu2 }
  0xef   : > { %v927_v14 = vadd.f32 %v853_v11, %v607_v8 }
  0xf0   : > { %v1131_v15 = vpop.f32.mrf.mxu3  ;;  %v397_v10 = vpop.f32.mrf.mxu0 }
  0xf1   : > { %v3678_v12 = vadd.f32 %v1131_v15, %v927_v14  ;;  %v609_v9 = vpop.f32.mrf.mxu1  ;;  %v238_v14 = vld [vmem:[%s3119_s7 + $0x159] sm:$0xff]  ;;  %v2665_v15 = vld [vmem:[%s3119_s7 + $0x2f0] sm:$0xff] }
  0xf2   : > { %v610_v13 = vadd.f32 %v609_v9, %v397_v10 }
  0xf3   : > { %4276 = vst [vmem:[#allocation69_spill] sm:$0xff] %v3678_v12  ;;  %2599 = vmatmul.msk.f32.gmra.mxu0 %vm243_vm1, %v237_v6  ;;  %2698 = vmatmul.msk.f32.gmra.mxu2 %vm243_vm1, %v2664_v3  ;;  %v205_v6 = vld [vmem:[%s3119_s7 + $0x158] sm:$0xff] }
  0xf4   : > { %2632 = vmatmul.msk.f32.gmra.mxu1 %vm243_vm1, %v204_v5  ;;  %v2731_v3 = vld [vmem:[%s3119_s7 + $0x2f1] sm:$0xff] }
  0xf5   : > { %2764 = vmatmul.msk.f32.gmra.mxu3 %vm243_vm1, %v2730_v1 }
  0xf6   : > { %v856_v7 = vpop.f32.mrf.mxu2 }
  0xf7   : > { %v928_v8 = vadd.f32 %v856_v7, %v610_v13  ;;  %v239_v7 = vld [vmem:[%s3119_s7 + $0x169] sm:$0xff] }
  0xf8   : > { %v1134_v11 = vpop.f32.mrf.mxu3  ;;  %v400_v0 = vpop.f32.mrf.mxu0 }
  0xf9   : > { %v3688_v12 = vadd.f32 %v1134_v11, %v928_v8  ;;  %v612_v4 = vpop.f32.mrf.mxu1  ;;  %v2666_v8 = vld [vmem:[%s3119_s7 + $0x300] sm:$0xff] }
  0xfa   : > { %v613_v1 = vadd.f32 %v612_v4, %v400_v0 }
  0xfb   : > { %4277 = vst [vmem:[#allocation70_spill] sm:$0xff] %v3688_v12  ;;  %2600 = vmatmul.msk.f32.gmra.mxu0 %vm243_vm1, %v238_v14  ;;  %2699 = vmatmul.msk.f32.gmra.mxu2 %vm243_vm1, %v2665_v15  ;;  %v206_v14 = vld [vmem:[%s3119_s7 + $0x168] sm:$0xff] }
  0xfc   : > { %2633 = vmatmul.msk.f32.gmra.mxu1 %vm243_vm1, %v205_v6  ;;  %v2732_v15 = vld [vmem:[%s3119_s7 + $0x301] sm:$0xff] }
  0xfd   : > { %2765 = vmatmul.msk.f32.gmra.mxu3 %vm243_vm1, %v2731_v3 }
  0xfe   : > { %v859_v5 = vpop.f32.mrf.mxu2 }
  0xff   : > { %v929_v10 = vadd.f32 %v859_v5, %v613_v1  ;;  %v240_v5 = vld [vmem:[%s3119_s7 + $0x171] sm:$0xff] }
 0x100   : > { %v1137_v9 = vpop.f32.mrf.mxu3  ;;  %v403_v13 = vpop.f32.mrf.mxu0 }
 0x101   : > { %v3698_v11 = vadd.f32 %v1137_v9, %v929_v10  ;;  %v615_v12 = vpop.f32.mrf.mxu1  ;;  %v2667_v10 = vld [vmem:[%s3119_s7 + $0x308] sm:$0xff] }
 0x102   : > { %v616_v0 = vadd.f32 %v615_v12, %v403_v13 }
 0x103   : > { %4278 = vst [vmem:[#allocation71_spill] sm:$0xff] %v3698_v11  ;;  %2601 = vmatmul.msk.f32.gmra.mxu0 %vm243_vm1, %v239_v7  ;;  %2700 = vmatmul.msk.f32.gmra.mxu2 %vm243_vm1, %v2666_v8 }
 0x104   : > { %2634 = vmatmul.msk.f32.gmra.mxu1 %vm243_vm1, %v206_v14 }
 0x105   : > { %2766 = vmatmul.msk.f32.gmra.mxu3 %vm243_vm1, %v2732_v15 }
 0x106   : > { %v862_v4 = vpop.f32.mrf.mxu2 }
 0x107   : > { %v930_v6 = vadd.f32 %v862_v4, %v616_v0 }
 0x108   : > { %v1140_v3 = vpop.f32.mrf.mxu3  ;;  %v406_v1 = vpop.f32.mrf.mxu0 }
 0x109   : > { %v3708_v9 = vadd.f32 %v1140_v3, %v930_v6  ;;  %v618_v11 = vpop.f32.mrf.mxu1 }
 0x10a   : > { %v619_v12 = vadd.f32 %v618_v11, %v406_v1 }
 0x10b   : > { %2602 = vmatmul.msk.f32.gmra.mxu0 %vm243_vm1, %v240_v5  ;;  %2701 = vmatmul.msk.f32.gmra.mxu2 %vm243_vm1, %v2667_v10 }
 0x10c   : > { %2635 = vmatmul.msk.f32.gmra.mxu1 %vm243_vm1, %v207_v2 }
 0x10d   : > { %2767 = vmatmul.msk.f32.gmra.mxu3 %vm243_vm1, %v2733_v63 }
 0x10e   : > { %v865_v13 = vpop.f32.mrf.mxu2 }
 0x10f   : > { %v931_v7 = vadd.f32 %v865_v13, %v619_v12 }
 0x110   : > { %v1143_v8 = vpop.f32.mrf.mxu3  ;;  %v409_v14 = vpop.f32.mrf.mxu0 }
 0x111   : > { %v3716_v15 = vadd.f32 %v1143_v8, %v931_v7  ;;  %v621_v0 = vpop.f32.mrf.mxu1 }
 0x112   : > { %v622_v63 = vadd.f32 %v621_v0, %v409_v14 }
 0x113   : > { %2802 = vmatmul.msk.f32.vlgmr.msrb.gmra.mxu0 %vm243_vm1, %v3144_v18  ;;  %2934 = vmatmul.msk.f32.vlgmr.msrb.gmra.mxu2 %vm243_vm1, %v3141_v17 }
 0x114   : > { %2868 = vmatmul.msk.f32.vlgmr.msrb.gmra.mxu1 %vm243_vm1, %v3138_v16 }
 0x115   : > { %3000 = vmatmul.msk.f32.vlgmr.msrb.gmra.mxu3 %vm243_vm1, %v3147_v19 }
 0x116   : > { %v868_v2 = vpop.f32.mrf.mxu2 }
 0x117   : > { %v932_v11 = vadd.f32 %v868_v2, %v622_v63 }
 0x118   : > { %v1146_v4 = vpop.f32.mrf.mxu3  ;;  %v412_v6 = vpop.f32.mrf.mxu0 }
 0x119   : > { %v3726_v3 = vadd.f32 %v1146_v4, %v932_v11  ;;  %v624_v1 = vpop.f32.mrf.mxu1 }
 0x11a   : > { %v625_v16 = vadd.f32 %v624_v1, %v412_v6 }
 0x11b   : > { %2803 = vmatmul.msk.f32.gmra.mxu0 %vm243_vm1, %v3164_v22  ;;  %2935 = vmatmul.msk.f32.gmra.mxu2 %vm243_vm1, %v3161_v21 }
 0x11c   : > { %2869 = vmatmul.msk.f32.gmra.mxu1 %vm243_vm1, %v3158_v20 }
 0x11d   : > { %3001 = vmatmul.msk.f32.gmra.mxu3 %vm243_vm1, %v3167_v23 }
 0x11e   : > { %v871_v17 = vpop.f32.mrf.mxu2 }
 0x11f   : > { %v933_v18 = vadd.f32 %v871_v17, %v625_v16 }
 0x120   : > { %v1149_v19 = vpop.f32.mrf.mxu3  ;;  %v415_v5 = vpop.f32.mrf.mxu0 }
 0x121   : > { %v3736_v10 = vadd.f32 %v1149_v19, %v933_v18  ;;  %v627_v12 = vpop.f32.mrf.mxu1 }
 0x122   : > { %v628_v20 = vadd.f32 %v627_v12, %v415_v5 }
 0x123   : > { %2804 = vmatmul.msk.f32.gmra.mxu0 %vm243_vm1, %v3184_v26  ;;  %2936 = vmatmul.msk.f32.gmra.mxu2 %vm243_vm1, %v3181_v25 }
 0x124   : > { %2870 = vmatmul.msk.f32.gmra.mxu1 %vm243_vm1, %v3178_v24 }
 0x125   : > { %3002 = vmatmul.msk.f32.gmra.mxu3 %vm243_vm1, %v3187_v27 }
 0x126   : > { %v874_v21 = vpop.f32.mrf.mxu2 }
 0x127   : > { %v934_v22 = vadd.f32 %v874_v21, %v628_v20 }
 0x128   : > { %v1152_v23 = vpop.f32.mrf.mxu3  ;;  %v418_v13 = vpop.f32.mrf.mxu0 }
 0x129   : > { %v3746_v7 = vadd.f32 %v1152_v23, %v934_v22  ;;  %v630_v8 = vpop.f32.mrf.mxu1 }
 0x12a   : > { %v631_v24 = vadd.f32 %v630_v8, %v418_v13 }
 0x12b   : > { %2805 = vmatmul.msk.f32.gmra.mxu0 %vm243_vm1, %v3204_v30  ;;  %2937 = vmatmul.msk.f32.gmra.mxu2 %vm243_vm1, %v3201_v29 }
 0x12c   : > { %2871 = vmatmul.msk.f32.gmra.mxu1 %vm243_vm1, %v3198_v28 }
 0x12d   : > { %3003 = vmatmul.msk.f32.gmra.mxu3 %vm243_vm1, %v3207_v31 }
 0x12e   : > { %v877_v25 = vpop.f32.mrf.mxu2 }
 0x12f   : > { %v935_v26 = vadd.f32 %v877_v25, %v631_v24 }
 0x130   : > { %v1155_v27 = vpop.f32.mrf.mxu3  ;;  %v421_v14 = vpop.f32.mrf.mxu0 }
 0x131   : > { %v3756_v0 = vadd.f32 %v1155_v27, %v935_v26  ;;  %v633_v63 = vpop.f32.mrf.mxu1 }
 0x132   : > { %v634_v28 = vadd.f32 %v633_v63, %v421_v14 }
 0x133   : > { %2806 = vmatmul.msk.f32.gmra.mxu0 %vm243_vm1, %v3224_v34  ;;  %2938 = vmatmul.msk.f32.gmra.mxu2 %vm243_vm1, %v3221_v33 }
 0x134   : > { %2872 = vmatmul.msk.f32.gmra.mxu1 %vm243_vm1, %v3218_v32 }
 0x135   : > { %3004 = vmatmul.msk.f32.gmra.mxu3 %vm243_vm1, %v3227_v35 }
 0x136   : > { %v880_v29 = vpop.f32.mrf.mxu2 }
 0x137   : > { %v936_v30 = vadd.f32 %v880_v29, %v634_v28 }
 0x138   : > { %v1158_v31 = vpop.f32.mrf.mxu3  ;;  %v424_v2 = vpop.f32.mrf.mxu0 }
 0x139   : > { %v3766_v11 = vadd.f32 %v1158_v31, %v936_v30  ;;  %v636_v4 = vpop.f32.mrf.mxu1  ;;  %v4280_v30 = vld [vmem:[#allocation5_spill] sm:$0xff] }
 0x13a   : > { %v637_v32 = vadd.f32 %v636_v4, %v424_v2 }
 0x13b   : > { %2807 = vmatmul.msk.f32.gmra.mxu0 %vm243_vm1, %v3244_v38  ;;  %2939 = vmatmul.msk.f32.gmra.mxu2 %vm243_vm1, %v3241_v37 }
 0x13c   : > { %2873 = vmatmul.msk.f32.gmra.mxu1 %vm243_vm1, %v3238_v36 }
 0x13d   : > { %3005 = vmatmul.msk.f32.gmra.mxu3 %vm243_vm1, %v3247_v39 }
 0x13e   : > { %v883_v33 = vpop.f32.mrf.mxu2 }
 0x13f   : > { %v937_v34 = vadd.f32 %v883_v33, %v637_v32 }
 0x140   : > { %v1161_v35 = vpop.f32.mrf.mxu3  ;;  %v427_v6 = vpop.f32.mrf.mxu0 }
 0x141   : > { %v3776_v1 = vadd.f32 %v1161_v35, %v937_v34  ;;  %v639_v16 = vpop.f32.mrf.mxu1 }
 0x142   : > { %v640_v36 = vadd.f32 %v639_v16, %v427_v6  ;;  %v4284_v6 = vld [vmem:[#allocation9_spill] sm:$0xff]  ;;  %v4285_v16 = vld [vmem:[#allocation8_spill] sm:$0xff] }
 0x143   : > { %2808 = vmatmul.msk.f32.gmra.mxu0 %vm243_vm1, %v3264_v42  ;;  %2940 = vmatmul.msk.f32.gmra.mxu2 %vm243_vm1, %v3261_v41 }
 0x144   : > { %2874 = vmatmul.msk.f32.gmra.mxu1 %vm243_vm1, %v3258_v40 }
 0x145   : > { %3006 = vmatmul.msk.f32.gmra.mxu3 %vm243_vm1, %v3267_v43 }
 0x146   : > { %v886_v37 = vpop.f32.mrf.mxu2 }
 0x147   : > { %v938_v38 = vadd.f32 %v886_v37, %v640_v36  ;;  %v4286_v36 = vld [vmem:[#allocation7_spill] sm:$0xff]  ;;  %v4287_v37 = vld [vmem:[#allocation10_spill] sm:$0xff] }
 0x148   : > { %v1164_v39 = vpop.f32.mrf.mxu3  ;;  %v430_v17 = vpop.f32.mrf.mxu0 }
 0x149   : > { %v3786_v18 = vadd.f32 %v1164_v39, %v938_v38  ;;  %v642_v19 = vpop.f32.mrf.mxu1 }
 0x14a   : > { %v643_v40 = vadd.f32 %v642_v19, %v430_v17 }
 0x14b   : > { %2809 = vmatmul.msk.f32.gmra.mxu0 %vm243_vm1, %v3284_v46  ;;  %2941 = vmatmul.msk.f32.gmra.mxu2 %vm243_vm1, %v3281_v45 }
 0x14c   : > { %2875 = vmatmul.msk.f32.gmra.mxu1 %vm243_vm1, %v3278_v44 }
 0x14d   : > { %3007 = vmatmul.msk.f32.gmra.mxu3 %vm243_vm1, %v3287_v47 }
 0x14e   : > { %v889_v41 = vpop.f32.mrf.mxu2 }
 0x14f   : > { %v939_v42 = vadd.f32 %v889_v41, %v643_v40 }
 0x150   : > { %v1167_v43 = vpop.f32.mrf.mxu3  ;;  %v433_v5 = vpop.f32.mrf.mxu0 }
 0x151   : > { %v3796_v12 = vadd.f32 %v1167_v43, %v939_v42  ;;  %v645_v20 = vpop.f32.mrf.mxu1  ;;  %v4288_v43 = vld [vmem:[#allocation13_spill] sm:$0xff] }
 0x152   : > { %v646_v44 = vadd.f32 %v645_v20, %v433_v5  ;;  %v4289_v5 = vld [vmem:[#allocation12_spill] sm:$0xff]  ;;  %v4290_v20 = vld [vmem:[#allocation11_spill] sm:$0xff] }
 0x153   : > { %2810 = vmatmul.msk.f32.gmra.mxu0 %vm243_vm1, %v3304_v50  ;;  %2942 = vmatmul.msk.f32.gmra.mxu2 %vm243_vm1, %v3301_v49 }
 0x154   : > { %2876 = vmatmul.msk.f32.gmra.mxu1 %vm243_vm1, %v3298_v48 }
 0x155   : > { %3008 = vmatmul.msk.f32.gmra.mxu3 %vm243_vm1, %v3307_v51 }
 0x156   : > { %v892_v45 = vpop.f32.mrf.mxu2 }
 0x157   : > { %v940_v46 = vadd.f32 %v892_v45, %v646_v44  ;;  %v4291_v44 = vld [vmem:[#allocation14_spill] sm:$0xff] }
 0x158   : > { %v1170_v47 = vpop.f32.mrf.mxu3  ;;  %v436_v21 = vpop.f32.mrf.mxu0 }
 0x159   : > { %v3806_v22 = vadd.f32 %v1170_v47, %v940_v46  ;;  %v648_v23 = vpop.f32.mrf.mxu1 }
 0x15a   : > { %v649_v48 = vadd.f32 %v648_v23, %v436_v21 }
 0x15b   : > { %2811 = vmatmul.msk.f32.gmra.mxu0 %vm243_vm1, %v3324_v54  ;;  %2943 = vmatmul.msk.f32.gmra.mxu2 %vm243_vm1, %v3321_v53 }
 0x15c   : > { %2877 = vmatmul.msk.f32.gmra.mxu1 %vm243_vm1, %v3318_v52 }
 0x15d   : > { %3009 = vmatmul.msk.f32.gmra.mxu3 %vm243_vm1, %v3327_v55 }
 0x15e   : > { %v895_v49 = vpop.f32.mrf.mxu2 }
 0x15f   : > { %v941_v50 = vadd.f32 %v895_v49, %v649_v48 }
 0x160   : > { %v1173_v51 = vpop.f32.mrf.mxu3  ;;  %v439_v13 = vpop.f32.mrf.mxu0 }
 0x161   : > { %v3816_v8 = vadd.f32 %v1173_v51, %v941_v50  ;;  %v651_v24 = vpop.f32.mrf.mxu1  ;;  %v4292_v50 = vld [vmem:[#allocation18_spill] sm:$0xff]  ;;  %v4293_v51 = vld [vmem:[#allocation16_spill] sm:$0xff] }
 0x162   : > { %v652_v52 = vadd.f32 %v651_v24, %v439_v13  ;;  %v4294_v13 = vld [vmem:[#allocation15_spill] sm:$0xff] }
 0x163   : > { %2812 = vmatmul.msk.f32.gmra.mxu0 %vm243_vm1, %v3344_v58  ;;  %2944 = vmatmul.msk.f32.gmra.mxu2 %vm243_vm1, %v3341_v57  ;;  %v4295_v24 = vld [vmem:[#allocation19_spill] sm:$0xff] }
 0x164   : > { %2878 = vmatmul.msk.f32.gmra.mxu1 %vm243_vm1, %v3338_v56  ;;  %v4279_v56 = vld [vmem:[#allocation2_spill] sm:$0xff] }
 0x165   : > { %3010 = vmatmul.msk.f32.gmra.mxu3 %vm243_vm1, %v3347_v59 }
 0x166   : > { %v898_v53 = vpop.f32.mrf.mxu2 }
 0x167   : > { %v942_v54 = vadd.f32 %v898_v53, %v652_v52 }
 0x168   : > { %v1176_v55 = vpop.f32.mrf.mxu3  ;;  %v442_v25 = vpop.f32.mrf.mxu0 }
 0x169   : > { %v3826_v26 = vadd.f32 %v1176_v55, %v942_v54  ;;  %v654_v27 = vpop.f32.mrf.mxu1 }
 0x16a   : > { %v655_v57 = vadd.f32 %v654_v27, %v442_v25 }
 0x16b   : > { %2813 = vmatmul.msk.f32.gmra.mxu0 %vm243_vm1, %v3364_v62  ;;  %2945 = vmatmul.msk.f32.gmra.mxu2 %vm243_vm1, %v3361_v61  ;;  %v4281_v62 = vld [vmem:[#allocation4_spill] sm:$0xff]  ;;  %v4282_v61 = vld [vmem:[#allocation3_spill] sm:$0xff] }
 0x16c   : > { %2879 = vmatmul.msk.f32.gmra.mxu1 %vm243_vm1, %v3358_v60  ;;  %v4283_v60 = vld [vmem:[#allocation6_spill] sm:$0xff] }
 0x16d   : > { %3011 = vmatmul.msk.f32.gmra.mxu3 %vm243_vm1, %v4279_v56  ;;  %v4296_v56 = vld [vmem:[#allocation17_spill] sm:$0xff] }
 0x16e   : > { %v901_v58 = vpop.f32.mrf.mxu2 }
 0x16f   : > { %v943_v59 = vadd.f32 %v901_v58, %v655_v57 }
 0x170   : > { %v1179_v14 = vpop.f32.mrf.mxu3  ;;  %v445_v63 = vpop.f32.mrf.mxu0 }
 0x171   : > { %v3836_v28 = vadd.f32 %v1179_v14, %v943_v59  ;;  %v657_v29 = vpop.f32.mrf.mxu1  ;;  %v4297_v59 = vld [vmem:[#allocation23_spill] sm:$0xff]  ;;  %v4298_v14 = vld [vmem:[#allocation21_spill] sm:$0xff] }
 0x172   : > { %v658_v31 = vadd.f32 %v657_v29, %v445_v63  ;;  %v4299_v63 = vld [vmem:[#allocation20_spill] sm:$0xff] }
 0x173   : > { %2814 = vmatmul.msk.f32.gmra.mxu0 %vm243_vm1, %v4280_v30  ;;  %2946 = vmatmul.msk.f32.gmra.mxu2 %vm243_vm1, %v4281_v62  ;;  %v4300_v29 = vld [vmem:[#allocation24_spill] sm:$0xff] }
 0x174   : > { %2880 = vmatmul.msk.f32.gmra.mxu1 %vm243_vm1, %v4282_v61 }
 0x175   : > { %3012 = vmatmul.msk.f32.gmra.mxu3 %vm243_vm1, %v4283_v60 }
 0x176   : > { %v904_v2 = vpop.f32.mrf.mxu2 }
 0x177   : > { %v944_v4 = vadd.f32 %v904_v2, %v658_v31  ;;  %v3892_v31 = vld [vmem:[%s4151_s2] ss:$0 sm:$0xff] }
 0x178   : > { %v1182_v32 = vpop.f32.mrf.mxu3  ;;  %v448_v33 = vpop.f32.mrf.mxu0 }
 0x179   : > { %v3846_v34 = vadd.f32 %v1182_v32, %v944_v4  ;;  %v660_v35 = vpop.f32.mrf.mxu1  ;;  %v4301_v4 = vld [vmem:[#allocation22_spill] sm:$0xff] }
 0x17a   : > { %v661_v38 = vadd.f32 %v660_v35, %v448_v33 }
 0x17b   : > { %2815 = vmatmul.msk.f32.gmra.mxu0 %vm243_vm1, %v4284_v6  ;;  %2947 = vmatmul.msk.f32.gmra.mxu2 %vm243_vm1, %v4285_v16  ;;  %v4302_v16 = vld [vmem:[#allocation28_spill] sm:$0xff] }
 0x17c   : > { %2881 = vmatmul.msk.f32.gmra.mxu1 %vm243_vm1, %v4286_v36  ;;  %v4303_v36 = vld [vmem:[#allocation26_spill] sm:$0xff] }
 0x17d   : > { %3013 = vmatmul.msk.f32.gmra.mxu3 %vm243_vm1, %v4287_v37  ;;  %v4304_v37 = vld [vmem:[#allocation25_spill] sm:$0xff] }
 0x17e   : > { %v907_v39 = vpop.f32.mrf.mxu2 }
 0x17f   : > { %v945_v17 = vadd.f32 %v907_v39, %v661_v38  ;;  %v4305_v38 = vld [vmem:[#allocation29_spill] sm:$0xff] }
 0x180   : > { %v1185_v19 = vpop.f32.mrf.mxu3  ;;  %v451_v40 = vpop.f32.mrf.mxu0 }
 0x181   : > { %v3856_v41 = vadd.f32 %v1185_v19, %v945_v17  ;;  %v663_v42 = vpop.f32.mrf.mxu1 }
 0x182   : > { %v664_v45 = vadd.f32 %v663_v42, %v451_v40 }
 0x183   : > { %2816 = vmatmul.msk.f32.gmra.mxu0 %vm243_vm1, %v4288_v43  ;;  %2948 = vmatmul.msk.f32.gmra.mxu2 %vm243_vm1, %v4289_v5 }
 0x184   : > { %2882 = vmatmul.msk.f32.gmra.mxu1 %vm243_vm1, %v4290_v20  ;;  %v4306_v20 = vld [vmem:[#allocation27_spill] sm:$0xff] }
 0x185   : > { %3014 = vmatmul.msk.f32.gmra.mxu3 %vm243_vm1, %v4291_v44 }
 0x186   : > { %v910_v46 = vpop.f32.mrf.mxu2 }
 0x187   : > { %v946_v47 = vadd.f32 %v910_v46, %v664_v45 }
 0x188   : > { %v1188_v21 = vpop.f32.mrf.mxu3  ;;  %v454_v23 = vpop.f32.mrf.mxu0 }
 0x189   : > { %v3866_v48 = vadd.f32 %v1188_v21, %v946_v47  ;;  %v666_v49 = vpop.f32.mrf.mxu1  ;;  %v4307_v21 = vld [vmem:[#allocation33_spill] sm:$0xff] }
 0x18a   : > { %v667_v52 = vadd.f32 %v666_v49, %v454_v23  ;;  %v4308_v23 = vld [vmem:[#allocation31_spill] sm:$0xff]  ;;  %v4309_v49 = vld [vmem:[#allocation30_spill] sm:$0xff] }
 0x18b   : > { %2817 = vmatmul.msk.f32.gmra.mxu0 %vm243_vm1, %v4292_v50  ;;  %2949 = vmatmul.msk.f32.gmra.mxu2 %vm243_vm1, %v4293_v51  ;;  %v4310_v50 = vld [vmem:[#allocation34_spill] sm:$0xff] }
 0x18c   : > { %2883 = vmatmul.msk.f32.gmra.mxu1 %vm243_vm1, %v4294_v13 }
 0x18d   : > { %3015 = vmatmul.msk.f32.gmra.mxu3 %vm243_vm1, %v4295_v24 }
 0x18e   : > { %v913_v53 = vpop.f32.mrf.mxu2 }
 0x18f   : > { %v947_v54 = vadd.f32 %v913_v53, %v667_v52 }
 0x190   : > { %v1191_v55 = vpop.f32.mrf.mxu3  ;;  %v1377_v25 = vpop.f32.mrf.mxu0 }
 0x191   : > { %v3876_v27 = vadd.f32 %v1191_v55, %v947_v54  ;;  %v1473_v57 = vadd.f32 %v1377_v25, %v4296_v56  ;;  %v1655_v58 = vpop.f32.mrf.mxu1  ;;  %v4311_v25 = vld [vmem:[#allocation32_spill] sm:$0xff] }
 0x193   : > { %2818 = vmatmul.msk.f32.gmra.mxu0 %vm243_vm1, %v4297_v59  ;;  %2950 = vmatmul.msk.f32.gmra.mxu2 %vm243_vm1, %v4298_v14  ;;  %v1751_v30 = vadd.f32 %v1655_v58, %v1473_v57  ;;  %v4312_v14 = vld [vmem:[#allocation38_spill] sm:$0xff] }
 0x194   : > { %2884 = vmatmul.msk.f32.gmra.mxu1 %vm243_vm1, %v4299_v63  ;;  %v4313_v63 = vld [vmem:[#allocation36_spill] sm:$0xff] }
 0x195   : > { %3016 = vmatmul.msk.f32.gmra.mxu3 %vm243_vm1, %v4300_v29  ;;  %v4314_v29 = vld [vmem:[#allocation35_spill] sm:$0xff] }
 0x196   : > { %v1934_v62 = vpop.f32.mrf.mxu2 }
 0x197   : > { %v2030_v61 = vadd.f32 %v1934_v62, %v1751_v30  ;;  %v4315_v30 = vld [vmem:[#allocation39_spill] sm:$0xff] }
 0x198   : > { %v2212_v60 = vpop.f32.mrf.mxu3  ;;  %v1380_v2 = vpop.f32.mrf.mxu0 }
 0x199   : > { %v1474_v32 = vadd.f32 %v1380_v2, %v4301_v4  ;;  %v2308_v33 = vadd.f32 %v2212_v60, %v2030_v61  ;;  %v1658_v35 = vpop.f32.mrf.mxu1 }
 0x19b   : > { %v2344_v6 = vadd.f32 %v3892_v31, %v2308_v33  ;;  %2819 = vmatmul.msk.f32.gmra.mxu0 %vm243_vm1, %v4302_v16  ;;  %2951 = vmatmul.msk.f32.gmra.mxu2 %vm243_vm1, %v4303_v36  ;;  %v1752_v17 = vadd.f32 %v1658_v35, %v1474_v32  ;;  %v4316_v35 = vld [vmem:[#allocation37_spill] sm:$0xff] }
 0x19c   : > { %2885 = vmatmul.msk.f32.gmra.mxu1 %vm243_vm1, %v4304_v37 }
 0x19d   : > { %3017 = vmatmul.msk.f32.gmra.mxu3 %vm243_vm1, %v4305_v38  ;;  %vm2376_vm2 = vcmp.gt.f32.partialorder %v2344_v6, 0.0  ;;  %v2408_v39 = vmul.f32 0.2, %v2344_v6  ;;  %v4317_v38 = vld [vmem:[#allocation43_spill] sm:$0xff] }
 0x19e   : > { %v1937_v19 = vpop.f32.mrf.mxu2 }
 0x19f   : > { %v2440_v40 = vsel %vm2376_vm2, %v2344_v6, %v2408_v39  ;;  %v2031_v42 = vadd.f32 %v1937_v19, %v1752_v17  ;;  %v4318_v39 = vld [vmem:[#allocation41_spill] sm:$0xff]  ;;  %v4319_v17 = vld [vmem:[#allocation40_spill] sm:$0xff] }
 0x1a0   : > { %v2215_v43 = vpop.f32.mrf.mxu3  ;;  %2473 = vst.msk [vmem:[%s3907_s15] sm:$0xff] %vm2472_vm3, %v2440_v40  ;;  %v1383_v5 = vpop.f32.mrf.mxu0  ;;  %v4320_v19 = vld [vmem:[#allocation44_spill] sm:$0xff] }
 0x1a1   : > { %v1475_v44 = vadd.f32 %v1383_v5, %v4306_v20  ;;  %v2309_v45 = vadd.f32 %v2215_v43, %v2031_v42  ;;  %v1661_v46 = vpop.f32.mrf.mxu1 }
 0x1a3   : > { %v2345_v47 = vadd.f32 %v3892_v31, %v2309_v45  ;;  %2820 = vmatmul.msk.f32.gmra.mxu0 %vm243_vm1, %v4307_v21  ;;  %2952 = vmatmul.msk.f32.gmra.mxu2 %vm243_vm1, %v4308_v23  ;;  %v1753_v13 = vadd.f32 %v1661_v46, %v1475_v44  ;;  %v4321_v46 = vld [vmem:[#allocation42_spill] sm:$0xff] }
 0x1a4   : > { %2886 = vmatmul.msk.f32.gmra.mxu1 %vm243_vm1, %v4309_v49 }
 0x1a5   : > { %3018 = vmatmul.msk.f32.gmra.mxu3 %vm243_vm1, %v4310_v50  ;;  %vm2377_vm4 = vcmp.gt.f32.partialorder %v2345_v47, 0.0  ;;  %v2409_v51 = vmul.f32 0.2, %v2345_v47  ;;  %v4322_v50 = vld [vmem:[#allocation48_spill] sm:$0xff] }
 0x1a6   : > { %v1940_v24 = vpop.f32.mrf.mxu2 }
 0x1a7   : > { %v2441_v52 = vsel %vm2377_vm4, %v2345_v47, %v2409_v51  ;;  %v2032_v53 = vadd.f32 %v1940_v24, %v1753_v13  ;;  %v4323_v51 = vld [vmem:[#allocation46_spill] sm:$0xff]  ;;  %v4324_v13 = vld [vmem:[#allocation45_spill] sm:$0xff] }
 0x1a8   : > { %v2218_v54 = vpop.f32.mrf.mxu3  ;;  %2474 = vst.msk [vmem:[%s3907_s15 + $0x8] sm:$0xff] %vm2472_vm3, %v2441_v52  ;;  %v1386_v55 = vpop.f32.mrf.mxu0  ;;  %v4325_v24 = vld [vmem:[#allocation49_spill] sm:$0xff] }
 0x1a9   : > { %v1476_v56 = vadd.f32 %v1386_v55, %v4311_v25  ;;  %v2310_v57 = vadd.f32 %v2218_v54, %v2032_v53  ;;  %v1664_v58 = vpop.f32.mrf.mxu1 }
 0x1ab   : > { %v2346_v59 = vadd.f32 %v3892_v31, %v2310_v57  ;;  %2821 = vmatmul.msk.f32.gmra.mxu0 %vm243_vm1, %v4312_v14  ;;  %2953 = vmatmul.msk.f32.gmra.mxu2 %vm243_vm1, %v4313_v63  ;;  %v1754_v61 = vadd.f32 %v1664_v58, %v1476_v56  ;;  %v4326_v58 = vld [vmem:[#allocation47_spill] sm:$0xff] }
 0x1ac   : > { %2887 = vmatmul.msk.f32.gmra.mxu1 %vm243_vm1, %v4314_v29 }
 0x1ad   : > { %3019 = vmatmul.msk.f32.gmra.mxu3 %vm243_vm1, %v4315_v30  ;;  %vm2378_vm5 = vcmp.gt.f32.partialorder %v2346_v59, 0.0  ;;  %v2410_v62 = vmul.f32 0.2, %v2346_v59  ;;  %v4327_v30 = vld [vmem:[#allocation53_spill] sm:$0xff] }
 0x1ae   : > { %v1943_v60 = vpop.f32.mrf.mxu2 }
 0x1af   : > { %v2442_v2 = vsel %vm2378_vm5, %v2346_v59, %v2410_v62  ;;  %v2033_v4 = vadd.f32 %v1943_v60, %v1754_v61  ;;  %v4328_v62 = vld [vmem:[#allocation51_spill] sm:$0xff]  ;;  %v4329_v61 = vld [vmem:[#allocation50_spill] sm:$0xff] }
 0x1b0   : > { %v2221_v32 = vpop.f32.mrf.mxu3  ;;  %2475 = vst.msk [vmem:[%s3907_s15 + $0x10] sm:$0xff] %vm2472_vm3, %v2442_v2  ;;  %v1389_v33 = vpop.f32.mrf.mxu0  ;;  %v4330_v60 = vld [vmem:[#allocation54_spill] sm:$0xff] }
 0x1b1   : > { %v1477_v6 = vadd.f32 %v1389_v33, %v4316_v35  ;;  %v2311_v16 = vadd.f32 %v2221_v32, %v2033_v4  ;;  %v1667_v36 = vpop.f32.mrf.mxu1 }
 0x1b3   : > { %v2347_v37 = vadd.f32 %v3892_v31, %v2311_v16  ;;  %2822 = vmatmul.msk.f32.gmra.mxu0 %vm243_vm1, %v4317_v38  ;;  %2954 = vmatmul.msk.f32.gmra.mxu2 %vm243_vm1, %v4318_v39  ;;  %v1755_v42 = vadd.f32 %v1667_v36, %v1477_v6  ;;  %v4331_v36 = vld [vmem:[#allocation52_spill] sm:$0xff] }
 0x1b4   : > { %2888 = vmatmul.msk.f32.gmra.mxu1 %vm243_vm1, %v4319_v17 }
 0x1b5   : > { %3020 = vmatmul.msk.f32.gmra.mxu3 %vm243_vm1, %v4320_v19  ;;  %vm2379_vm6 = vcmp.gt.f32.partialorder %v2347_v37, 0.0  ;;  %v2411_v40 = vmul.f32 0.2, %v2347_v37  ;;  %v4332_v19 = vld [vmem:[#allocation58_spill] sm:$0xff] }
 0x1b6   : > { %v1946_v43 = vpop.f32.mrf.mxu2 }
 0x1b7   : > { %v2443_v5 = vsel %vm2379_vm6, %v2347_v37, %v2411_v40  ;;  %v2034_v20 = vadd.f32 %v1946_v43, %v1755_v42  ;;  %v4333_v40 = vld [vmem:[#allocation56_spill] sm:$0xff]  ;;  %v4334_v42 = vld [vmem:[#allocation55_spill] sm:$0xff] }
 0x1b8   : > { %v2224_v44 = vpop.f32.mrf.mxu3  ;;  %2476 = vst.msk [vmem:[%s3907_s15 + $0x18] sm:$0xff] %vm2472_vm3, %v2443_v5  ;;  %v1392_v45 = vpop.f32.mrf.mxu0  ;;  %v4335_v43 = vld [vmem:[#allocation59_spill] sm:$0xff] }
 0x1b9   : > { %v1478_v47 = vadd.f32 %v1392_v45, %v4321_v46  ;;  %v2312_v21 = vadd.f32 %v2224_v44, %v2034_v20  ;;  %v1670_v23 = vpop.f32.mrf.mxu1 }
 0x1bb   : > { %v2348_v49 = vadd.f32 %v3892_v31, %v2312_v21  ;;  %2823 = vmatmul.msk.f32.gmra.mxu0 %vm243_vm1, %v4322_v50  ;;  %2955 = vmatmul.msk.f32.gmra.mxu2 %vm243_vm1, %v4323_v51  ;;  %v1756_v53 = vadd.f32 %v1670_v23, %v1478_v47  ;;  %v4336_v23 = vld [vmem:[#allocation57_spill] sm:$0xff] }
 0x1bc   : > { %2889 = vmatmul.msk.f32.gmra.mxu1 %vm243_vm1, %v4324_v13 }
 0x1bd   : > { %3021 = vmatmul.msk.f32.gmra.mxu3 %vm243_vm1, %v4325_v24  ;;  %vm2380_vm7 = vcmp.gt.f32.partialorder %v2348_v49, 0.0  ;;  %v2412_v52 = vmul.f32 0.2, %v2348_v49  ;;  %v4337_v24 = vld [vmem:[#allocation63_spill] sm:$0xff] }
 0x1be   : > { %v1949_v54 = vpop.f32.mrf.mxu2 }
 0x1bf   : > { %v2444_v55 = vsel %vm2380_vm7, %v2348_v49, %v2412_v52  ;;  %v2035_v25 = vadd.f32 %v1949_v54, %v1756_v53  ;;  %v4338_v52 = vld [vmem:[#allocation61_spill] sm:$0xff]  ;;  %v4339_v53 = vld [vmem:[#allocation60_spill] sm:$0xff] }
 0x1c0   : > { %v2227_v56 = vpop.f32.mrf.mxu3  ;;  %2477 = vst.msk [vmem:[%s3907_s15 + $0x20] sm:$0xff] %vm2472_vm3, %v2444_v55  ;;  %v1395_v57 = vpop.f32.mrf.mxu0  ;;  %v4340_v54 = vld [vmem:[#allocation64_spill] sm:$0xff] }
 0x1c1   : > { %v1479_v59 = vadd.f32 %v1395_v57, %v4326_v58  ;;  %v2313_v14 = vadd.f32 %v2227_v56, %v2035_v25  ;;  %v1673_v63 = vpop.f32.mrf.mxu1 }
 0x1c3   : > { %v2349_v29 = vadd.f32 %v3892_v31, %v2313_v14  ;;  %2824 = vmatmul.msk.f32.gmra.mxu0 %vm243_vm1, %v4327_v30  ;;  %2956 = vmatmul.msk.f32.gmra.mxu2 %vm243_vm1, %v4328_v62  ;;  %v1757_v4 = vadd.f32 %v1673_v63, %v1479_v59  ;;  %v4341_v63 = vld [vmem:[#allocation62_spill] sm:$0xff] }
 0x1c4   : > { %2890 = vmatmul.msk.f32.gmra.mxu1 %vm243_vm1, %v4329_v61  ;;  %v2859_v61 = vld [vmem:[%s3119_s7 + $0x141] sm:$0xff] }
 0x1c5   : > { %3022 = vmatmul.msk.f32.gmra.mxu3 %vm243_vm1, %v4330_v60  ;;  %vm2381_vm8 = vcmp.gt.f32.partialorder %v2349_v29, 0.0  ;;  %v2413_v2 = vmul.f32 0.2, %v2349_v29 }
 0x1c6   : > { %v1952_v32 = vpop.f32.mrf.mxu2 }
 0x1c7   : > { %v2445_v33 = vsel %vm2381_vm8, %v2349_v29, %v2413_v2  ;;  %v2036_v35 = vadd.f32 %v1952_v32, %v1757_v4  ;;  %v4342_v2 = vld [vmem:[#allocation67_spill] sm:$0xff]  ;;  %v4343_v4 = vld [vmem:[#allocation65_spill] sm:$0xff]  ;;  %v4344_v32 = vld [vmem:[#allocation68_spill] sm:$0xff] }
 0x1c8   : > { %v2230_v6 = vpop.f32.mrf.mxu3  ;;  %2478 = vst.msk [vmem:[%s3907_s15 + $0x28] sm:$0xff] %vm2472_vm3, %v2445_v33  ;;  %v1398_v16 = vpop.f32.mrf.mxu0 }
 0x1c9   : > { %v1480_v37 = vadd.f32 %v1398_v16, %v4331_v36  ;;  %v2314_v38 = vadd.f32 %v2230_v6, %v2036_v35  ;;  %v1676_v39 = vpop.f32.mrf.mxu1 }
 0x1cb   : > { %v2350_v17 = vadd.f32 %v3892_v31, %v2314_v38  ;;  %2825 = vmatmul.msk.f32.gmra.mxu0 %vm243_vm1, %v4332_v19  ;;  %2957 = vmatmul.msk.f32.gmra.mxu2 %vm243_vm1, %v4333_v40  ;;  %v1758_v20 = vadd.f32 %v1676_v39, %v1480_v37  ;;  %v2794_v39 = vld [vmem:[%s3119_s7 + $0x150] sm:$0xff]  ;;  %v4345_v19 = vld [vmem:[#allocation66_spill] sm:$0xff] }
 0x1cc   : > { %2891 = vmatmul.msk.f32.gmra.mxu1 %vm243_vm1, %v4334_v42 }
 0x1cd   : > { %3023 = vmatmul.msk.f32.gmra.mxu3 %vm243_vm1, %v4335_v43  ;;  %vm2382_vm9 = vcmp.gt.f32.partialorder %v2350_v17, 0.0  ;;  %v2414_v5 = vmul.f32 0.2, %v2350_v17 }
 0x1ce   : > { %v1955_v44 = vpop.f32.mrf.mxu2 }
 0x1cf   : > { %v2446_v45 = vsel %vm2382_vm9, %v2350_v17, %v2414_v5  ;;  %v2037_v46 = vadd.f32 %v1955_v44, %v1758_v20  ;;  %v2926_v17 = vld [vmem:[%s3119_s7 + $0x2e8] sm:$0xff]  ;;  %v2860_v5 = vld [vmem:[%s3119_s7 + $0x151] sm:$0xff] }
 0x1d0   : > { %v2233_v47 = vpop.f32.mrf.mxu3  ;;  %2479 = vst.msk [vmem:[%s3907_s15 + $0x30] sm:$0xff] %vm2472_vm3, %v2446_v45  ;;  %v1401_v21 = vpop.f32.mrf.mxu0  ;;  %v2992_v20 = vld [vmem:[%s3119_s7 + $0x2e9] sm:$0xff] }
 0x1d1   : > { %v1481_v49 = vadd.f32 %v1401_v21, %v4336_v23  ;;  %v2315_v50 = vadd.f32 %v2233_v47, %v2037_v46  ;;  %v1679_v51 = vpop.f32.mrf.mxu1 }
 0x1d3   : > { %v2351_v13 = vadd.f32 %v3892_v31, %v2315_v50  ;;  %2826 = vmatmul.msk.f32.gmra.mxu0 %vm243_vm1, %v4337_v24  ;;  %2958 = vmatmul.msk.f32.gmra.mxu2 %vm243_vm1, %v4338_v52  ;;  %v1759_v25 = vadd.f32 %v1679_v51, %v1481_v49  ;;  %v2795_v51 = vld [vmem:[%s3119_s7 + $0x158] sm:$0xff] }
 0x1d4   : > { %2892 = vmatmul.msk.f32.gmra.mxu1 %vm243_vm1, %v4339_v53  ;;  %v4346_v24 = vld [vmem:[#allocation69_spill] sm:$0xff] }
 0x1d5   : > { %3024 = vmatmul.msk.f32.gmra.mxu3 %vm243_vm1, %v4340_v54  ;;  %vm2383_vm10 = vcmp.gt.f32.partialorder %v2351_v13, 0.0  ;;  %v2415_v55 = vmul.f32 0.2, %v2351_v13 }
 0x1d6   : > { %v1958_v56 = vpop.f32.mrf.mxu2 }
 0x1d7   : > { %v2447_v57 = vsel %vm2383_vm10, %v2351_v13, %v2415_v55  ;;  %v2038_v58 = vadd.f32 %v1958_v56, %v1759_v25  ;;  %v2927_v13 = vld [vmem:[%s3119_s7 + $0x2f0] sm:$0xff]  ;;  %v2861_v55 = vld [vmem:[%s3119_s7 + $0x159] sm:$0xff] }
 0x1d8   : > { %v2236_v59 = vpop.f32.mrf.mxu3  ;;  %2480 = vst.msk [vmem:[%s3907_s15 + $0x38] sm:$0xff] %vm2472_vm3, %v2447_v57  ;;  %v1404_v14 = vpop.f32.mrf.mxu0  ;;  %v2993_v25 = vld [vmem:[%s3119_s7 + $0x2f1] sm:$0xff] }
 0x1d9   : > { %v1482_v29 = vadd.f32 %v1404_v14, %v4341_v63  ;;  %v2316_v30 = vadd.f32 %v2236_v59, %v2038_v58  ;;  %v1682_v62 = vpop.f32.mrf.mxu1 }
 0x1db   : > { %v2352_v60 = vadd.f32 %v3892_v31, %v2316_v30  ;;  %2827 = vmatmul.msk.f32.gmra.mxu0 %vm243_vm1, %v4342_v2  ;;  %2959 = vmatmul.msk.f32.gmra.mxu2 %vm243_vm1, %v4343_v4  ;;  %v1760_v35 = vadd.f32 %v1682_v62, %v1482_v29  ;;  %v2796_v62 = vld [vmem:[%s3119_s7 + $0x168] sm:$0xff] }
 0x1dc   : > { %2893 = vmatmul.msk.f32.gmra.mxu1 %vm243_vm1, %v2859_v61  ;;  %v2928_v61 = vld [vmem:[%s3119_s7 + $0x300] sm:$0xff] }
 0x1dd   : > { %3025 = vmatmul.msk.f32.gmra.mxu3 %vm243_vm1, %v4344_v32  ;;  %vm2384_vm11 = vcmp.gt.f32.partialorder %v2352_v60, 0.0  ;;  %v2416_v33 = vmul.f32 0.2, %v2352_v60 }
 0x1de   : > { %v1961_v6 = vpop.f32.mrf.mxu2 }
 0x1df   : > { %v2448_v16 = vsel %vm2384_vm11, %v2352_v60, %v2416_v33  ;;  %v2039_v36 = vadd.f32 %v1961_v6, %v1760_v35  ;;  %v4347_v60 = vld [vmem:[#allocation70_spill] sm:$0xff]  ;;  %v2862_v33 = vld [vmem:[%s3119_s7 + $0x169] sm:$0xff] }
 0x1e0   : > { %v2239_v37 = vpop.f32.mrf.mxu3  ;;  %2481 = vst.msk [vmem:[%s3907_s15 + $0x40] sm:$0xff] %vm2472_vm3, %v2448_v16  ;;  %v1407_v38 = vpop.f32.mrf.mxu0  ;;  %v2994_v35 = vld [vmem:[%s3119_s7 + $0x301] sm:$0xff] }
 0x1e1   : > { %v1483_v40 = vadd.f32 %v1407_v38, %v4345_v19  ;;  %v2317_v42 = vadd.f32 %v2239_v37, %v2039_v36  ;;  %v1685_v43 = vpop.f32.mrf.mxu1 }
 0x1e3   : > { %v2353_v44 = vadd.f32 %v3892_v31, %v2317_v42  ;;  %2828 = vmatmul.msk.f32.gmra.mxu0 %vm243_vm1, %v2794_v39  ;;  %2960 = vmatmul.msk.f32.gmra.mxu2 %vm243_vm1, %v2926_v17  ;;  %v1761_v46 = vadd.f32 %v1685_v43, %v1483_v40  ;;  %v2797_v40 = vld [vmem:[%s3119_s7 + $0x170] sm:$0xff]  ;;  %v2929_v42 = vld [vmem:[%s3119_s7 + $0x308] sm:$0xff] }
 0x1e4   : > { %2894 = vmatmul.msk.f32.gmra.mxu1 %vm243_vm1, %v2860_v5  ;;  %v4348_v43 = vld [vmem:[#allocation71_spill] sm:$0xff] }
 0x1e5   : > { %3026 = vmatmul.msk.f32.gmra.mxu3 %vm243_vm1, %v2992_v20  ;;  %vm2385_vm12 = vcmp.gt.f32.partialorder %v2353_v44, 0.0  ;;  %v2417_v45 = vmul.f32 0.2, %v2353_v44 }
 0x1e6   : > { %v1964_v47 = vpop.f32.mrf.mxu2 }
 0x1e7   : > { %v2449_v21 = vsel %vm2385_vm12, %v2353_v44, %v2417_v45  ;;  %v2040_v23 = vadd.f32 %v1964_v47, %v1761_v46  ;;  %v2863_v45 = vld [vmem:[%s3119_s7 + $0x171] sm:$0xff]  ;;  %v2995_v46 = vld [vmem:[%s3119_s7 + $0x309] sm:$0xff] }
 0x1e8   : > { %v2242_v49 = vpop.f32.mrf.mxu3  ;;  %2482 = vst.msk [vmem:[%s3907_s15 + $0x48] sm:$0xff] %vm2472_vm3, %v2449_v21  ;;  %v1410_v50 = vpop.f32.mrf.mxu0 }
 0x1e9   : > { %v1484_v52 = vadd.f32 %v1410_v50, %v4346_v24  ;;  %v2318_v53 = vadd.f32 %v2242_v49, %v2040_v23  ;;  %v1688_v54 = vpop.f32.mrf.mxu1 }
 0x1eb   : > { %v2354_v56 = vadd.f32 %v3892_v31, %v2318_v53  ;;  %2829 = vmatmul.msk.f32.gmra.mxu0 %vm243_vm1, %v2795_v51  ;;  %2961 = vmatmul.msk.f32.gmra.mxu2 %vm243_vm1, %v2927_v13  ;;  %v1762_v58 = vadd.f32 %v1688_v54, %v1484_v52  ;;  %v2798_v52 = vld [vmem:[%s3119_s7 + $0x180] sm:$0xff]  ;;  %v2930_v53 = vld [vmem:[%s3119_s7 + $0x318] sm:$0xff] }
 0x1ec   : > { %2895 = vmatmul.msk.f32.gmra.mxu1 %vm243_vm1, %v2861_v55 }
 0x1ed   : > { %3027 = vmatmul.msk.f32.gmra.mxu3 %vm243_vm1, %v2993_v25  ;;  %vm2386_vm13 = vcmp.gt.f32.partialorder %v2354_v56, 0.0  ;;  %v2418_v57 = vmul.f32 0.2, %v2354_v56 }
 0x1ee   : > { %v1967_v59 = vpop.f32.mrf.mxu2 }
 0x1ef   : > { %v2450_v14 = vsel %vm2386_vm13, %v2354_v56, %v2418_v57  ;;  %v2041_v63 = vadd.f32 %v1967_v59, %v1762_v58  ;;  %v2864_v56 = vld [vmem:[%s3119_s7 + $0x181] sm:$0xff]  ;;  %v2996_v57 = vld [vmem:[%s3119_s7 + $0x319] sm:$0xff] }
 0x1f0   : > { %v2245_v29 = vpop.f32.mrf.mxu3  ;;  %2483 = vst.msk [vmem:[%s3907_s15 + $0x50] sm:$0xff] %vm2472_vm3, %v2450_v14  ;;  %v1413_v30 = vpop.f32.mrf.mxu0 }
 0x1f1   : > { %v1485_v2 = vadd.f32 %v1413_v30, %v4347_v60  ;;  %v2319_v4 = vadd.f32 %v2245_v29, %v2041_v63  ;;  %v1691_v32 = vpop.f32.mrf.mxu1  ;;  %v2931_v60 = vld [vmem:[%s3119_s7 + $0x320] sm:$0xff] }
 0x1f3   : > { %v2355_v6 = vadd.f32 %v3892_v31, %v2319_v4  ;;  %2830 = vmatmul.msk.f32.gmra.mxu0 %vm243_vm1, %v2796_v62  ;;  %2962 = vmatmul.msk.f32.gmra.mxu2 %vm243_vm1, %v2928_v61  ;;  %v1763_v36 = vadd.f32 %v1691_v32, %v1485_v2  ;;  %v2799_v61 = vld [vmem:[%s3119_s7 + $0x188] sm:$0xff] }
 0x1f4   : > { %2896 = vmatmul.msk.f32.gmra.mxu1 %vm243_vm1, %v2862_v33  ;;  %v2865_v33 = vld [vmem:[%s3119_s7 + $0x189] sm:$0xff] }
 0x1f5   : > { %3028 = vmatmul.msk.f32.gmra.mxu3 %vm243_vm1, %v2994_v35  ;;  %vm2387_vm14 = vcmp.gt.f32.partialorder %v2355_v6, 0.0  ;;  %v2419_v16 = vmul.f32 0.2, %v2355_v6  ;;  %v2997_v35 = vld [vmem:[%s3119_s7 + $0x321] sm:$0xff] }
 0x1f6   : > { %v1970_v37 = vpop.f32.mrf.mxu2 }
 0x1f7   : > { %v2451_v38 = vsel %vm2387_vm14, %v2355_v6, %v2419_v16  ;;  %v2042_v39 = vadd.f32 %v1970_v37, %v1763_v36 }
 0x1f8   : > { %v2248_v17 = vpop.f32.mrf.mxu3  ;;  %2484 = vst.msk [vmem:[%s3907_s15 + $0x58] sm:$0xff] %vm2472_vm3, %v2451_v38  ;;  %v1416_v19 = vpop.f32.mrf.mxu0 }
 0x1f9   : > { %v1486_v5 = vadd.f32 %v1416_v19, %v4348_v43  ;;  %v2320_v20 = vadd.f32 %v2248_v17, %v2042_v39  ;;  %v1694_v44 = vpop.f32.mrf.mxu1 }
 0x1fb   : > { %v2356_v47 = vadd.f32 %v3892_v31, %v2320_v20  ;;  %2831 = vmatmul.msk.f32.gmra.mxu0 %vm243_vm1, %v2797_v40  ;;  %2963 = vmatmul.msk.f32.gmra.mxu2 %vm243_vm1, %v2929_v42  ;;  %v1764_v23 = vadd.f32 %v1694_v44, %v1486_v5 }
 0x1fc   : > { %2897 = vmatmul.msk.f32.gmra.mxu1 %vm243_vm1, %v2863_v45 }
 0x1fd   : > { %3029 = vmatmul.msk.f32.gmra.mxu3 %vm243_vm1, %v2995_v46  ;;  %vm2388_vm15 = vcmp.gt.f32.partialorder %v2356_v47, 0.0  ;;  %v2420_v21 = vmul.f32 0.2, %v2356_v47 }
 0x1fe   : > { %v1973_v49 = vpop.f32.mrf.mxu2 }
 0x1ff   : > { %v2452_v50 = vsel %vm2388_vm15, %v2356_v47, %v2420_v21  ;;  %v2043_v51 = vadd.f32 %v1973_v49, %v1764_v23 }
 0x200   : > { %v2251_v13 = vpop.f32.mrf.mxu3  ;;  %2485 = vst.msk [vmem:[%s3907_s15 + $0x60] sm:$0xff] %vm2472_vm3, %v2452_v50  ;;  %v1419_v24 = vpop.f32.mrf.mxu0 }
 0x201   : > { %v1487_v54 = vadd.f32 %v1419_v24, %v3708_v9  ;;  %v2321_v55 = vadd.f32 %v2251_v13, %v2043_v51  ;;  %v1697_v25 = vpop.f32.mrf.mxu1 }
 0x203   : > { %v2357_v58 = vadd.f32 %v3892_v31, %v2321_v55  ;;  %2832 = vmatmul.msk.f32.gmra.mxu0 %vm243_vm1, %v2798_v52  ;;  %2964 = vmatmul.msk.f32.gmra.mxu2 %vm243_vm1, %v2930_v53  ;;  %v1765_v59 = vadd.f32 %v1697_v25, %v1487_v54 }
 0x204   : > { %2898 = vmatmul.msk.f32.gmra.mxu1 %vm243_vm1, %v2864_v56 }
 0x205   : > { %3030 = vmatmul.msk.f32.gmra.mxu3 %vm243_vm1, %v2996_v57  ;;  %vm2389_vm0 = vcmp.gt.f32.partialorder %v2357_v58, 0.0  ;;  %v2421_v9 = vmul.f32 0.2, %v2357_v58 }
 0x206   : > { %v1976_v14 = vpop.f32.mrf.mxu2 }
 0x207   : > { %v2453_v63 = vsel %vm2389_vm0, %v2357_v58, %v2421_v9  ;;  %v2044_v29 = vadd.f32 %v1976_v14, %v1765_v59 }
 0x208   : > { %v2254_v30 = vpop.f32.mrf.mxu3  ;;  %2486 = vst.msk [vmem:[%s3907_s15 + $0x68] sm:$0xff] %vm2472_vm3, %v2453_v63  ;;  %v1422_v62 = vpop.f32.mrf.mxu0 }
 0x209   : > { %v1488_v2 = vadd.f32 %v1422_v62, %v3716_v15  ;;  %v2322_v4 = vadd.f32 %v2254_v30, %v2044_v29  ;;  %v1700_v32 = vpop.f32.mrf.mxu1 }
 0x20b   : > { %v2358_v6 = vadd.f32 %v3892_v31, %v2322_v4  ;;  %2833 = vmatmul.msk.f32.gmra.mxu0 %vm243_vm1, %v2799_v61  ;;  %2965 = vmatmul.msk.f32.gmra.mxu2 %vm243_vm1, %v2931_v60  ;;  %v1766_v36 = vadd.f32 %v1700_v32, %v1488_v2 }
 0x20c   : > { %2899 = vmatmul.msk.f32.gmra.mxu1 %vm243_vm1, %v2865_v33 }
 0x20d   : > { %3031 = vmatmul.msk.f32.gmra.mxu3 %vm243_vm1, %v2997_v35  ;;  %vm2390_vm2 = vcmp.gt.f32.partialorder %v2358_v6, 0.0  ;;  %v2422_v16 = vmul.f32 0.2, %v2358_v6 }
 0x20e   : > { %v1979_v37 = vpop.f32.mrf.mxu2 }
 0x20f   : > { %v2454_v15 = vsel %vm2390_vm2, %v2358_v6, %v2422_v16  ;;  %v2045_v38 = vadd.f32 %v1979_v37, %v1766_v36 }
 0x210   : > { %v2257_v39 = vpop.f32.mrf.mxu3  ;;  %2487 = vst.msk [vmem:[%s3907_s15 + $0x70] sm:$0xff] %vm2472_vm3, %v2454_v15  ;;  %v1425_v17 = vpop.f32.mrf.mxu0 }
 0x211   : > { %v1489_v19 = vadd.f32 %v1425_v17, %v3726_v3  ;;  %v2323_v40 = vadd.f32 %v2257_v39, %v2045_v38  ;;  %v1703_v42 = vpop.f32.mrf.mxu1 }
 0x213   : > { %v2359_v43 = vadd.f32 %v3892_v31, %v2323_v40  ;;  %v1767_v20 = vadd.f32 %v1703_v42, %v1489_v19 }
 0x215   : > { %vm2391_vm4 = vcmp.gt.f32.partialorder %v2359_v43, 0.0  ;;  %v2423_v5 = vmul.f32 0.2, %v2359_v43 }
 0x216   : > { %v1982_v44 = vpop.f32.mrf.mxu2 }
 0x217   : > { %v2455_v45 = vsel %vm2391_vm4, %v2359_v43, %v2423_v5  ;;  %v2046_v46 = vadd.f32 %v1982_v44, %v1767_v20 }
 0x218   : > { %v2260_v47 = vpop.f32.mrf.mxu3  ;;  %2488 = vst.msk [vmem:[%s3907_s15 + $0x78] sm:$0xff] %vm2472_vm3, %v2455_v45  ;;  %v1428_v21 = vpop.f32.mrf.mxu0 }
 0x219   : > { %v1490_v23 = vadd.f32 %v1428_v21, %v3736_v10  ;;  %v2324_v49 = vadd.f32 %v2260_v47, %v2046_v46  ;;  %v1706_v50 = vpop.f32.mrf.mxu1 }
 0x21b   : > { %v2360_v3 = vadd.f32 %v3892_v31, %v2324_v49  ;;  %v1768_v13 = vadd.f32 %v1706_v50, %v1490_v23 }
 0x21d   : > { %vm2392_vm1 = vcmp.gt.f32.partialorder %v2360_v3, 0.0  ;;  %v2424_v51 = vmul.f32 0.2, %v2360_v3 }
 0x21e   : > { %v1985_v24 = vpop.f32.mrf.mxu2 }
 0x21f   : > { %v2456_v52 = vsel %vm2392_vm1, %v2360_v3, %v2424_v51  ;;  %v2047_v53 = vadd.f32 %v1985_v24, %v1768_v13 }
 0x220   : > { %v2263_v54 = vpop.f32.mrf.mxu3  ;;  %2489 = vst.msk [vmem:[%s3907_s15 + $0x80] sm:$0xff] %vm2472_vm3, %v2456_v52  ;;  %v1431_v55 = vpop.f32.mrf.mxu0 }
 0x221   : > { %v1491_v25 = vadd.f32 %v1431_v55, %v3746_v7  ;;  %v2325_v56 = vadd.f32 %v2263_v54, %v2047_v53  ;;  %v1709_v57 = vpop.f32.mrf.mxu1 }
 0x223   : > { %v2361_v10 = vadd.f32 %v3892_v31, %v2325_v56  ;;  %v1769_v9 = vadd.f32 %v1709_v57, %v1491_v25 }
 0x225   : > { %vm2393_vm5 = vcmp.gt.f32.partialorder %v2361_v10, 0.0  ;;  %v2425_v58 = vmul.f32 0.2, %v2361_v10 }
 0x226   : > { %v1988_v59 = vpop.f32.mrf.mxu2 }
 0x227   : > { %v2457_v14 = vsel %vm2393_vm5, %v2361_v10, %v2425_v58  ;;  %v2048_v63 = vadd.f32 %v1988_v59, %v1769_v9 }
 0x228   : > { %v2266_v29 = vpop.f32.mrf.mxu3  ;;  %2490 = vst.msk [vmem:[%s3907_s15 + $0x88] sm:$0xff] %vm2472_vm3, %v2457_v14  ;;  %v1434_v30 = vpop.f32.mrf.mxu0 }
 0x229   : > { %v1492_v62 = vadd.f32 %v1434_v30, %v3756_v0  ;;  %v2326_v61 = vadd.f32 %v2266_v29, %v2048_v63  ;;  %v1712_v60 = vpop.f32.mrf.mxu1 }
 0x22b   : > { %v2362_v7 = vadd.f32 %v3892_v31, %v2326_v61  ;;  %v1770_v4 = vadd.f32 %v1712_v60, %v1492_v62 }
 0x22d   : > { %vm2394_vm6 = vcmp.gt.f32.partialorder %v2362_v7, 0.0  ;;  %v2426_v2 = vmul.f32 0.2, %v2362_v7 }
 0x22e   : > { %v1991_v32 = vpop.f32.mrf.mxu2 }
 0x22f   : > { %v2458_v33 = vsel %vm2394_vm6, %v2362_v7, %v2426_v2  ;;  %v2049_v35 = vadd.f32 %v1991_v32, %v1770_v4 }
 0x230   : > { %v2269_v6 = vpop.f32.mrf.mxu3  ;;  %2491 = vst.msk [vmem:[%s3907_s15 + $0x90] sm:$0xff] %vm2472_vm3, %v2458_v33  ;;  %v1437_v16 = vpop.f32.mrf.mxu0 }
 0x231   : > { %v1493_v36 = vadd.f32 %v1437_v16, %v3766_v11  ;;  %v2327_v37 = vadd.f32 %v2269_v6, %v2049_v35  ;;  %v1715_v15 = vpop.f32.mrf.mxu1 }
 0x233   : > { %v2363_v0 = vadd.f32 %v3892_v31, %v2327_v37  ;;  %v1771_v39 = vadd.f32 %v1715_v15, %v1493_v36 }
 0x235   : > { %vm2395_vm7 = vcmp.gt.f32.partialorder %v2363_v0, 0.0  ;;  %v2427_v38 = vmul.f32 0.2, %v2363_v0 }
 0x236   : > { %v1994_v17 = vpop.f32.mrf.mxu2 }
 0x237   : > { %v2459_v19 = vsel %vm2395_vm7, %v2363_v0, %v2427_v38  ;;  %v2050_v40 = vadd.f32 %v1994_v17, %v1771_v39 }
 0x238   : > { %v2272_v42 = vpop.f32.mrf.mxu3  ;;  %2492 = vst.msk [vmem:[%s3907_s15 + $0x98] sm:$0xff] %vm2472_vm3, %v2459_v19  ;;  %v1440_v43 = vpop.f32.mrf.mxu0 }
 0x239   : > { %v1494_v5 = vadd.f32 %v1440_v43, %v3776_v1  ;;  %v2328_v20 = vadd.f32 %v2272_v42, %v2050_v40  ;;  %v1718_v44 = vpop.f32.mrf.mxu1 }
 0x23b   : > { %v2364_v11 = vadd.f32 %v3892_v31, %v2328_v20  ;;  %v1772_v46 = vadd.f32 %v1718_v44, %v1494_v5 }
 0x23d   : > { %vm2396_vm8 = vcmp.gt.f32.partialorder %v2364_v11, 0.0  ;;  %v2428_v45 = vmul.f32 0.2, %v2364_v11 }
 0x23e   : > { %v1997_v47 = vpop.f32.mrf.mxu2 }
 0x23f   : > { %v2460_v21 = vsel %vm2396_vm8, %v2364_v11, %v2428_v45  ;;  %v2051_v23 = vadd.f32 %v1997_v47, %v1772_v46 }
 0x240   : > { %v2275_v49 = vpop.f32.mrf.mxu3  ;;  %2493 = vst.msk [vmem:[%s3907_s15 + $0xa0] sm:$0xff] %vm2472_vm3, %v2460_v21  ;;  %v1443_v50 = vpop.f32.mrf.mxu0 }
 0x241   : > { %v1495_v3 = vadd.f32 %v1443_v50, %v3786_v18  ;;  %v2329_v51 = vadd.f32 %v2275_v49, %v2051_v23  ;;  %v1721_v13 = vpop.f32.mrf.mxu1 }
 0x243   : > { %v2365_v1 = vadd.f32 %v3892_v31, %v2329_v51  ;;  %v1773_v52 = vadd.f32 %v1721_v13, %v1495_v3 }
 0x245   : > { %vm2397_vm9 = vcmp.gt.f32.partialorder %v2365_v1, 0.0  ;;  %v2429_v24 = vmul.f32 0.2, %v2365_v1 }
 0x246   : > { %v2000_v53 = vpop.f32.mrf.mxu2 }
 0x247   : > { %v2461_v54 = vsel %vm2397_vm9, %v2365_v1, %v2429_v24  ;;  %v2052_v55 = vadd.f32 %v2000_v53, %v1773_v52 }
 0x248   : > { %v2278_v25 = vpop.f32.mrf.mxu3  ;;  %2494 = vst.msk [vmem:[%s3907_s15 + $0xa8] sm:$0xff] %vm2472_vm3, %v2461_v54  ;;  %v1446_v56 = vpop.f32.mrf.mxu0 }
 0x249   : > { %v1496_v57 = vadd.f32 %v1446_v56, %v3796_v12  ;;  %v2330_v10 = vadd.f32 %v2278_v25, %v2052_v55  ;;  %v1724_v58 = vpop.f32.mrf.mxu1 }
 0x24b   : > { %v2366_v18 = vadd.f32 %v3892_v31, %v2330_v10  ;;  %v1774_v59 = vadd.f32 %v1724_v58, %v1496_v57 }
 0x24d   : > { %vm2398_vm10 = vcmp.gt.f32.partialorder %v2366_v18, 0.0  ;;  %v2430_v9 = vmul.f32 0.2, %v2366_v18 }
 0x24e   : > { %v2003_v14 = vpop.f32.mrf.mxu2 }
 0x24f   : > { %v2462_v63 = vsel %vm2398_vm10, %v2366_v18, %v2430_v9  ;;  %v2053_v29 = vadd.f32 %v2003_v14, %v1774_v59 }
 0x250   : > { %v2281_v30 = vpop.f32.mrf.mxu3  ;;  %2495 = vst.msk [vmem:[%s3907_s15 + $0xb0] sm:$0xff] %vm2472_vm3, %v2462_v63  ;;  %v1449_v62 = vpop.f32.mrf.mxu0 }
 0x251   : > { %v1497_v61 = vadd.f32 %v1449_v62, %v3806_v22  ;;  %v2331_v60 = vadd.f32 %v2281_v30, %v2053_v29  ;;  %v1727_v7 = vpop.f32.mrf.mxu1 }
 0x253   : > { %v2367_v12 = vadd.f32 %v3892_v31, %v2331_v60  ;;  %v1775_v4 = vadd.f32 %v1727_v7, %v1497_v61 }
 0x255   : > { %vm2399_vm11 = vcmp.gt.f32.partialorder %v2367_v12, 0.0  ;;  %v2431_v2 = vmul.f32 0.2, %v2367_v12 }
 0x256   : > { %v2006_v32 = vpop.f32.mrf.mxu2 }
 0x257   : > { %v2463_v33 = vsel %vm2399_vm11, %v2367_v12, %v2431_v2  ;;  %v2054_v35 = vadd.f32 %v2006_v32, %v1775_v4 }
 0x258   : > { %v2284_v6 = vpop.f32.mrf.mxu3  ;;  %2496 = vst.msk [vmem:[%s3907_s15 + $0xb8] sm:$0xff] %vm2472_vm3, %v2463_v33  ;;  %v1452_v16 = vpop.f32.mrf.mxu0 }
 0x259   : > { %v1498_v36 = vadd.f32 %v1452_v16, %v3816_v8  ;;  %v2332_v37 = vadd.f32 %v2284_v6, %v2054_v35  ;;  %v1730_v15 = vpop.f32.mrf.mxu1 }
 0x25b   : > { %v2368_v22 = vadd.f32 %v3892_v31, %v2332_v37  ;;  %v1776_v38 = vadd.f32 %v1730_v15, %v1498_v36 }
 0x25d   : > { %vm2400_vm12 = vcmp.gt.f32.partialorder %v2368_v22, 0.0  ;;  %v2432_v0 = vmul.f32 0.2, %v2368_v22 }
 0x25e   : > { %v2009_v39 = vpop.f32.mrf.mxu2 }
 0x25f   : > { %v2464_v17 = vsel %vm2400_vm12, %v2368_v22, %v2432_v0  ;;  %v2055_v19 = vadd.f32 %v2009_v39, %v1776_v38 }
 0x260   : > { %v2287_v40 = vpop.f32.mrf.mxu3  ;;  %2497 = vst.msk [vmem:[%s3907_s15 + $0xc0] sm:$0xff] %vm2472_vm3, %v2464_v17  ;;  %v1455_v42 = vpop.f32.mrf.mxu0 }
 0x261   : > { %v1499_v43 = vadd.f32 %v1455_v42, %v3826_v26  ;;  %v2333_v5 = vadd.f32 %v2287_v40, %v2055_v19  ;;  %v1733_v20 = vpop.f32.mrf.mxu1 }
 0x263   : > { %v2369_v8 = vadd.f32 %v3892_v31, %v2333_v5  ;;  %v1777_v11 = vadd.f32 %v1733_v20, %v1499_v43 }
 0x265   : > { %vm2401_vm13 = vcmp.gt.f32.partialorder %v2369_v8, 0.0  ;;  %v2433_v44 = vmul.f32 0.2, %v2369_v8 }
 0x266   : > { %v2012_v45 = vpop.f32.mrf.mxu2 }
 0x267   : > { %v2465_v46 = vsel %vm2401_vm13, %v2369_v8, %v2433_v44  ;;  %v2056_v47 = vadd.f32 %v2012_v45, %v1777_v11 }
 0x268   : > { %v2290_v21 = vpop.f32.mrf.mxu3  ;;  %2498 = vst.msk [vmem:[%s3907_s15 + $0xc8] sm:$0xff] %vm2472_vm3, %v2465_v46  ;;  %v1458_v23 = vpop.f32.mrf.mxu0 }
 0x269   : > { %v1500_v49 = vadd.f32 %v1458_v23, %v3836_v28  ;;  %v2334_v50 = vadd.f32 %v2290_v21, %v2056_v47  ;;  %v1736_v3 = vpop.f32.mrf.mxu1 }
 0x26b   : > { %v2370_v26 = vadd.f32 %v3892_v31, %v2334_v50  ;;  %v1778_v13 = vadd.f32 %v1736_v3, %v1500_v49 }
 0x26d   : > { %vm2402_vm14 = vcmp.gt.f32.partialorder %v2370_v26, 0.0  ;;  %v2434_v51 = vmul.f32 0.2, %v2370_v26 }
 0x26e   : > { %v2015_v1 = vpop.f32.mrf.mxu2 }
 0x26f   : > { %v2466_v24 = vsel %vm2402_vm14, %v2370_v26, %v2434_v51  ;;  %v2057_v52 = vadd.f32 %v2015_v1, %v1778_v13 }
 0x270   : > { %v2293_v53 = vpop.f32.mrf.mxu3  ;;  %2499 = vst.msk [vmem:[%s3907_s15 + $0xd0] sm:$0xff] %vm2472_vm3, %v2466_v24  ;;  %v1461_v54 = vpop.f32.mrf.mxu0 }
 0x271   : > { %v1501_v55 = vadd.f32 %v1461_v54, %v3846_v34  ;;  %v2335_v25 = vadd.f32 %v2293_v53, %v2057_v52  ;;  %v1739_v56 = vpop.f32.mrf.mxu1 }
 0x273   : > { %v2371_v28 = vadd.f32 %v3892_v31, %v2335_v25  ;;  %v1779_v10 = vadd.f32 %v1739_v56, %v1501_v55 }
 0x275   : > { %vm2403_vm15 = vcmp.gt.f32.partialorder %v2371_v28, 0.0  ;;  %v2435_v57 = vmul.f32 0.2, %v2371_v28 }
 0x276   : > { %v2018_v58 = vpop.f32.mrf.mxu2 }
 0x277   : > { %v2467_v18 = vsel %vm2403_vm15, %v2371_v28, %v2435_v57  ;;  %v2058_v9 = vadd.f32 %v2018_v58, %v1779_v10 }
 0x278   : > { %v2296_v59 = vpop.f32.mrf.mxu3  ;;  %2500 = vst.msk [vmem:[%s3907_s15 + $0xd8] sm:$0xff] %vm2472_vm3, %v2467_v18  ;;  %v1464_v14 = vpop.f32.mrf.mxu0 }
 0x279   : > { %v1502_v63 = vadd.f32 %v1464_v14, %v3856_v41  ;;  %v2336_v29 = vadd.f32 %v2296_v59, %v2058_v9  ;;  %v1742_v30 = vpop.f32.mrf.mxu1 }
 0x27b   : > { %v2372_v34 = vadd.f32 %v3892_v31, %v2336_v29  ;;  %v1780_v61 = vadd.f32 %v1742_v30, %v1502_v63 }
 0x27d   : > { %vm2404_vm0 = vcmp.gt.f32.partialorder %v2372_v34, 0.0  ;;  %v2436_v62 = vmul.f32 0.2, %v2372_v34 }
 0x27e   : > { %v2021_v60 = vpop.f32.mrf.mxu2 }
 0x27f   : > { %v2468_v7 = vsel %vm2404_vm0, %v2372_v34, %v2436_v62  ;;  %v2059_v12 = vadd.f32 %v2021_v60, %v1780_v61 }
 0x280   : > { %v2299_v2 = vpop.f32.mrf.mxu3  ;;  %2501 = vst.msk [vmem:[%s3907_s15 + $0xe0] sm:$0xff] %vm2472_vm3, %v2468_v7  ;;  %v1467_v4 = vpop.f32.mrf.mxu0 }
 0x281   : > { %v1503_v32 = vadd.f32 %v1467_v4, %v3866_v48  ;;  %v2337_v33 = vadd.f32 %v2299_v2, %v2059_v12  ;;  %v1745_v35 = vpop.f32.mrf.mxu1 }
 0x283   : > { %v2373_v41 = vadd.f32 %v3892_v31, %v2337_v33  ;;  %v1781_v16 = vadd.f32 %v1745_v35, %v1503_v32 }
 0x285   : > { %vm2405_vm2 = vcmp.gt.f32.partialorder %v2373_v41, 0.0  ;;  %v2437_v6 = vmul.f32 0.2, %v2373_v41 }
 0x286   : > { %v2024_v36 = vpop.f32.mrf.mxu2 }
 0x287   : > { %v2469_v37 = vsel %vm2405_vm2, %v2373_v41, %v2437_v6  ;;  %v2060_v15 = vadd.f32 %v2024_v36, %v1781_v16 }
 0x288   : > { %v2302_v22 = vpop.f32.mrf.mxu3  ;;  %2502 = vst.msk [vmem:[%s3907_s15 + $0xe8] sm:$0xff] %vm2472_vm3, %v2469_v37  ;;  %v1470_v0 = vpop.f32.mrf.mxu0 }
 0x289   : > { %v1504_v38 = vadd.f32 %v1470_v0, %v3876_v27  ;;  %v2338_v39 = vadd.f32 %v2302_v22, %v2060_v15  ;;  %v1748_v48 = vpop.f32.mrf.mxu1 }
 0x28b   : > { %v2374_v17 = vadd.f32 %v3892_v31, %v2338_v39  ;;  %v1782_v40 = vadd.f32 %v1748_v48, %v1504_v38 }
 0x28d   : > { %vm2406_vm4 = vcmp.gt.f32.partialorder %v2374_v17, 0.0  ;;  %v2438_v19 = vmul.f32 0.2, %v2374_v17 }
 0x28e   : > { %v2027_v42 = vpop.f32.mrf.mxu2 }
 0x28f   : > { %v2470_v43 = vsel %vm2406_vm4, %v2374_v17, %v2438_v19  ;;  %v2061_v5 = vadd.f32 %v2027_v42, %v1782_v40 }
 0x290   : > { %v2305_v20 = vpop.f32.mrf.mxu3  ;;  %2503 = vst.msk [vmem:[%s3907_s15 + $0xf0] sm:$0xff] %vm2472_vm3, %v2470_v43 }
 0x291   : > { %v2339_v8 = vadd.f32 %v2305_v20, %v2061_v5 }
 0x293   : > { %v2375_v44 = vadd.f32 %v3892_v31, %v2339_v8 }
 0x295   : > { %vm2407_vm1 = vcmp.gt.f32.partialorder %v2375_v44, 0.0  ;;  %v2439_v11 = vmul.f32 0.2, %v2375_v44 }
 0x297   : > { %v2471_v27 = vsel %vm2407_vm1, %v2375_v44, %v2439_v11 }
 0x298   : > { %2504 = vst.msk [vmem:[%s3907_s15 + $0xf8] sm:$0xff] %vm2472_vm3, %v2471_v27 }
 0x299 PF: > { %s13_s12 = sadd.s32 1, %s3051_s12  }
 0x29a   : > { %p10_p5 = scmp.ge.s32.totalorder %s13_s12, 4  }
 0x29c   :  { %12 = sbr.rel (!%p10_p5) target bundleno = 1 (0x1), region = 72 }

</bundles_post_ra>
